<compile_context>
chip_gen: v7x
topology: tpu7x:2x2x1
jax: 0.10.0
libtpu: 0.0.40
codegen_flags: <defaults>
</compile_context>

<pallas_src>
import jax
import jax.numpy as jnp
from jax.experimental import pallas as pl
from jax.experimental.pallas import tpu as pltpu


def lstm_head_kernel(x_ref, wih_ref, whh_ref, b_ref, wfc_ref, bfc_ref, y_ref):
    """x_ref: (B, T, I); y_ref: (B, T, O). Weights pre-transposed in wrapper."""
    B, T, I = x_ref.shape
    H = whh_ref.shape[0]

    wih = wih_ref[...]            # (I, 4H)
    whh = whh_ref[...]            # (H, 4H)
    bias = b_ref[...]             # (1, 4H)  (= b_ih + b_hh)
    wfc = wfc_ref[...]            # (H, O)
    bfc = bfc_ref[...]            # (1, O)

    # B and T are small compile-time constants -> fully unrolled static loops.
    for b in range(B):
        xb = x_ref[b]                                            # (T, I)
        # Hoisted input projection for ALL timesteps of this batch element.
        gx = jnp.dot(xb, wih, preferred_element_type=jnp.float32) + bias  # (T, 4H)

        h = jnp.zeros((1, H), jnp.float32)
        c = jnp.zeros((1, H), jnp.float32)
        hs = []
        for t in range(T):
            gates = gx[t:t + 1, :] + jnp.dot(
                h, whh, preferred_element_type=jnp.float32)      # (1, 4H) i,f,g,o
            i_g = jax.nn.sigmoid(gates[:, 0 * H:1 * H])
            f_g = jax.nn.sigmoid(gates[:, 1 * H:2 * H])
            g_g = jnp.tanh(gates[:, 2 * H:3 * H])
            o_g = jax.nn.sigmoid(gates[:, 3 * H:4 * H])
            c = f_g * c + i_g * g_g
            h = o_g * jnp.tanh(c)
            hs.append(h)

        hsb = jnp.concatenate(hs, axis=0)                        # (T, H)
        # Dropout: eval-mode identity.
        # TODO(synk): training-mode stochastic dropout (pltpu.prng_*) omitted.
        # Hoisted FC: one matmul + one store per batch element.
        y_ref[b] = (jnp.dot(hsb, wfc, preferred_element_type=jnp.float32)
                    + bfc).astype(y_ref.dtype)                   # (T, O)


def head_forward(x_bti, w_ih, w_hh, b_ih, b_hh, w_fc, b_fc):
    """x_bti: (B, T, I) batch_first like the PyTorch module. Returns (B, T, O)."""
    B, T, I = x_bti.shape
    H = w_hh.shape[1]
    O = w_fc.shape[0]

    wih_t = w_ih.T                                   # (I, 4H)
    whh_t = w_hh.T                                   # (H, 4H)
    b = (b_ih + b_hh).reshape(1, 4 * H)              # (1, 4H)
    wfc_t = w_fc.T                                   # (H, O)
    bfc = b_fc.reshape(1, O)                         # (1, O)

    return pl.pallas_call(
        lstm_head_kernel,
        out_shape=jax.ShapeDtypeStruct((B, T, O), x_bti.dtype),
        grid_spec=pltpu.PrefetchScalarGridSpec(
            num_scalar_prefetch=0,
            grid=(1,),                               # single invocation; whole seq in VMEM
            in_specs=[
                pl.BlockSpec((B, T, I), lambda i: (0, 0, 0)),
                pl.BlockSpec((I, 4 * H), lambda i: (0, 0)),
                pl.BlockSpec((H, 4 * H), lambda i: (0, 0)),
                pl.BlockSpec((1, 4 * H), lambda i: (0, 0)),
                pl.BlockSpec((H, O), lambda i: (0, 0)),
                pl.BlockSpec((1, O), lambda i: (0, 0)),
            ],
            out_specs=pl.BlockSpec((B, T, O), lambda i: (0, 0, 0)),
        ),
        compiler_params=pltpu.CompilerParams(
            dimension_semantics=("arbitrary",)),
    )(x_bti, wih_t, whh_t, b, wfc_t, bfc)


def head_reference(x, w_ih, w_hh, b_ih, b_hh, w_fc, b_fc):
    """Pure-JAX reference matching torch.nn.LSTM(batch_first)+Linear (eval)."""
    B, T, I = x.shape
    H = w_hh.shape[1]

    def step(carry, x_t):
        h, c = carry
        gates = x_t @ w_ih.T + b_ih + h @ w_hh.T + b_hh
        i = jax.nn.sigmoid(gates[:, :H])
        f = jax.nn.sigmoid(gates[:, H:2 * H])
        g = jnp.tanh(gates[:, 2 * H:3 * H])
        o = jax.nn.sigmoid(gates[:, 3 * H:4 * H])
        c = f * c + i * g
        h = o * jnp.tanh(c)
        return (h, c), h

    init = (jnp.zeros((B, H), jnp.float32), jnp.zeros((B, H), jnp.float32))
    _, hs = jax.lax.scan(step, init, jnp.transpose(x, (1, 0, 2)))
    hs = jnp.transpose(hs, (1, 0, 2))                # (B, T, H)
    return hs @ w_fc.T + b_fc


if __name__ == "__main__":
    # Head(type='lstm', input_size=32, hidden_size=32, num_layers=1,
    #      dropout=0.1, output_size=2)
    B, T, I, H, O = 2, 8, 32, 32, 2

    key = jax.random.PRNGKey(0)
    kx, k1, k2, k3, k4, k5, k6 = jax.random.split(key, 7)
    k = 1.0 / jnp.sqrt(H)   # PyTorch default init range for LSTM / Linear

    x = jax.random.normal(kx, (B, T, I), dtype=jnp.float32)
    w_ih = jax.random.uniform(k1, (4 * H, I), jnp.float32, -k, k)
    w_hh = jax.random.uniform(k2, (4 * H, H), jnp.float32, -k, k)
    b_ih = jax.random.uniform(k3, (4 * H,), jnp.float32, -k, k)
    b_hh = jax.random.uniform(k4, (4 * H,), jnp.float32, -k, k)
    w_fc = jax.random.uniform(k5, (O, H), jnp.float32, -k, k)
    b_fc = jax.random.uniform(k6, (O,), jnp.float32, -k, k)

    y = head_forward(x, w_ih, w_hh, b_ih, b_hh, w_fc, b_fc)
    y = jax.block_until_ready(y)

    y_ref = head_reference(x, w_ih, w_hh, b_ih, b_hh, w_fc, b_fc)
    assert y.shape == (B, T, O)
    assert jnp.allclose(y, y_ref, atol=1e-5, rtol=1e-5), (
        f"max err {jnp.max(jnp.abs(y - y_ref))}")

    print("KERNEL_OK")
</pallas_src>

<mosaic_0001>
module attributes {stable_mosaic.version = 11 : i64} {
  func.func @lstm_head_kernel(%arg0: i32, %arg1: memref<2x8x32xf32, #tpu.memory_space<vmem>>, %arg2: memref<32x128xf32, #tpu.memory_space<vmem>>, %arg3: memref<32x128xf32, #tpu.memory_space<vmem>>, %arg4: memref<1x128xf32, #tpu.memory_space<vmem>>, %arg5: memref<32x2xf32, #tpu.memory_space<vmem>>, %arg6: memref<1x2xf32, #tpu.memory_space<vmem>>, %arg7: memref<2x8x2xf32, #tpu.memory_space<vmem>>) attributes {dimension_semantics = [#tpu.dimension_semantics<arbitrary>], iteration_bounds = array<i64: 1>, scalar_prefetch = 0 : i64, scratch_operands = 0 : i64, tpu.core_type = #tpu.core_type<tc>, window_params = [{pipeline_mode = #tpu.pipeline_mode<synchronous>, transform_indices = @transform_0, window_bounds = array<i64: 2, 8, 32>}, {pipeline_mode = #tpu.pipeline_mode<synchronous>, transform_indices = @transform_1, window_bounds = array<i64: 32, 128>}, {pipeline_mode = #tpu.pipeline_mode<synchronous>, transform_indices = @transform_2, window_bounds = array<i64: 32, 128>}, {pipeline_mode = #tpu.pipeline_mode<synchronous>, transform_indices = @transform_3, window_bounds = array<i64: 1, 128>}, {pipeline_mode = #tpu.pipeline_mode<synchronous>, transform_indices = @transform_4, window_bounds = array<i64: 32, 2>}, {pipeline_mode = #tpu.pipeline_mode<synchronous>, transform_indices = @transform_5, window_bounds = array<i64: 1, 2>}, {pipeline_mode = #tpu.pipeline_mode<synchronous>, transform_indices = @transform_6, window_bounds = array<i64: 2, 8, 2>}]} {
    %c0 = arith.constant 0 : index
    %c0_0 = arith.constant 0 : index
    %0 = vector.load %arg2[%c0, %c0_0] : memref<32x128xf32, #tpu.memory_space<vmem>>, vector<32x128xf32>
    %c0_1 = arith.constant 0 : index
    %c0_2 = arith.constant 0 : index
    %1 = vector.load %arg3[%c0_1, %c0_2] : memref<32x128xf32, #tpu.memory_space<vmem>>, vector<32x128xf32>
    %c0_3 = arith.constant 0 : index
    %c0_4 = arith.constant 0 : index
    %2 = vector.load %arg4[%c0_3, %c0_4] : memref<1x128xf32, #tpu.memory_space<vmem>>, vector<1x128xf32>
    %c0_5 = arith.constant 0 : index
    %c0_6 = arith.constant 0 : index
    %3 = vector.load %arg5[%c0_5, %c0_6] : memref<32x2xf32, #tpu.memory_space<vmem>>, vector<32x2xf32>
    %c0_7 = arith.constant 0 : index
    %c0_8 = arith.constant 0 : index
    %4 = vector.load %arg6[%c0_7, %c0_8] : memref<1x2xf32, #tpu.memory_space<vmem>>, vector<1x2xf32>
    %c0_9 = arith.constant 0 : index
    %c0_10 = arith.constant 0 : index
    %c0_11 = arith.constant 0 : index
    %5 = vector.load %arg1[%c0_9, %c0_10, %c0_11] : memref<2x8x32xf32, #tpu.memory_space<vmem>>, vector<1x8x32xf32>
    %6 = vector.shape_cast %5 : vector<1x8x32xf32> to vector<8x32xf32>
    %cst = arith.constant dense<0.000000e+00> : vector<8x128xf32>
    %7 = tpu.matmul %6, %0, %cst {dimension_numbers = #tpu.dot_dimension_numbers<[1], [0], [0], [1], [0, 0, 1, 1], [], []>} : vector<8x32xf32>, vector<32x128xf32>, vector<8x128xf32> -> vector<8x128xf32>
    %8 = vector.broadcast %2 : vector<1x128xf32> to vector<8x128xf32>
    %9 = arith.addf %7, %8 : vector<8x128xf32>
    %cst_12 = arith.constant 0.000000e+00 : f32
    %10 = vector.broadcast %cst_12 : f32 to vector<1x32xf32>
    %cst_13 = arith.constant 0.000000e+00 : f32
    %11 = vector.broadcast %cst_13 : f32 to vector<1x32xf32>
    %12 = vector.extract_strided_slice %9 {offsets = [0, 0], sizes = [1, 128], strides = [1, 1]} : vector<8x128xf32> to vector<1x128xf32>
    %cst_14 = arith.constant dense<0.000000e+00> : vector<1x128xf32>
    %13 = tpu.matmul %10, %1, %cst_14 {dimension_numbers = #tpu.dot_dimension_numbers<[1], [0], [0], [1], [0, 0, 1, 1], [], []>} : vector<1x32xf32>, vector<32x128xf32>, vector<1x128xf32> -> vector<1x128xf32>
    %14 = arith.addf %12, %13 : vector<1x128xf32>
    %15 = vector.extract_strided_slice %14 {offsets = [0, 0], sizes = [1, 32], strides = [1, 1]} : vector<1x128xf32> to vector<1x32xf32>
    %16 = arith.negf %15 : vector<1x32xf32>
    %17 = math.exp %16 : vector<1x32xf32>
    %cst_15 = arith.constant 1.000000e+00 : f32
    %18 = vector.broadcast %cst_15 : f32 to vector<1x32xf32>
    %19 = arith.addf %18, %17 : vector<1x32xf32>
    %20 = arith.divf %18, %19 : vector<1x32xf32>
    %21 = vector.extract_strided_slice %14 {offsets = [0, 32], sizes = [1, 32], strides = [1, 1]} : vector<1x128xf32> to vector<1x32xf32>
    %22 = arith.negf %21 : vector<1x32xf32>
    %23 = math.exp %22 : vector<1x32xf32>
    %cst_16 = arith.constant 1.000000e+00 : f32
    %24 = vector.broadcast %cst_16 : f32 to vector<1x32xf32>
    %25 = arith.addf %24, %23 : vector<1x32xf32>
    %26 = arith.divf %24, %25 : vector<1x32xf32>
    %27 = vector.extract_strided_slice %14 {offsets = [0, 64], sizes = [1, 32], strides = [1, 1]} : vector<1x128xf32> to vector<1x32xf32>
    %28 = math.tanh %27 : vector<1x32xf32>
    %29 = vector.extract_strided_slice %14 {offsets = [0, 96], sizes = [1, 32], strides = [1, 1]} : vector<1x128xf32> to vector<1x32xf32>
    %30 = arith.negf %29 : vector<1x32xf32>
    %31 = math.exp %30 : vector<1x32xf32>
    %cst_17 = arith.constant 1.000000e+00 : f32
    %32 = vector.broadcast %cst_17 : f32 to vector<1x32xf32>
    %33 = arith.addf %32, %31 : vector<1x32xf32>
    %34 = arith.divf %32, %33 : vector<1x32xf32>
    %35 = arith.mulf %26, %11 : vector<1x32xf32>
    %36 = arith.mulf %20, %28 : vector<1x32xf32>
    %37 = arith.addf %35, %36 : vector<1x32xf32>
    %38 = math.tanh %37 : vector<1x32xf32>
    %39 = arith.mulf %34, %38 : vector<1x32xf32>
    %40 = vector.extract_strided_slice %9 {offsets = [1, 0], sizes = [1, 128], strides = [1, 1]} : vector<8x128xf32> to vector<1x128xf32>
    %cst_18 = arith.constant dense<0.000000e+00> : vector<1x128xf32>
    %41 = tpu.matmul %39, %1, %cst_18 {dimension_numbers = #tpu.dot_dimension_numbers<[1], [0], [0], [1], [0, 0, 1, 1], [], []>} : vector<1x32xf32>, vector<32x128xf32>, vector<1x128xf32> -> vector<1x128xf32>
    %42 = arith.addf %40, %41 : vector<1x128xf32>
    %43 = vector.extract_strided_slice %42 {offsets = [0, 0], sizes = [1, 32], strides = [1, 1]} : vector<1x128xf32> to vector<1x32xf32>
    %44 = arith.negf %43 : vector<1x32xf32>
    %45 = math.exp %44 : vector<1x32xf32>
    %cst_19 = arith.constant 1.000000e+00 : f32
    %46 = vector.broadcast %cst_19 : f32 to vector<1x32xf32>
    %47 = arith.addf %46, %45 : vector<1x32xf32>
    %48 = arith.divf %46, %47 : vector<1x32xf32>
    %49 = vector.extract_strided_slice %42 {offsets = [0, 32], sizes = [1, 32], strides = [1, 1]} : vector<1x128xf32> to vector<1x32xf32>
    %50 = arith.negf %49 : vector<1x32xf32>
    %51 = math.exp %50 : vector<1x32xf32>
    %cst_20 = arith.constant 1.000000e+00 : f32
    %52 = vector.broadcast %cst_20 : f32 to vector<1x32xf32>
    %53 = arith.addf %52, %51 : vector<1x32xf32>
    %54 = arith.divf %52, %53 : vector<1x32xf32>
    %55 = vector.extract_strided_slice %42 {offsets = [0, 64], sizes = [1, 32], strides = [1, 1]} : vector<1x128xf32> to vector<1x32xf32>
    %56 = math.tanh %55 : vector<1x32xf32>
    %57 = vector.extract_strided_slice %42 {offsets = [0, 96], sizes = [1, 32], strides = [1, 1]} : vector<1x128xf32> to vector<1x32xf32>
    %58 = arith.negf %57 : vector<1x32xf32>
    %59 = math.exp %58 : vector<1x32xf32>
    %cst_21 = arith.constant 1.000000e+00 : f32
    %60 = vector.broadcast %cst_21 : f32 to vector<1x32xf32>
    %61 = arith.addf %60, %59 : vector<1x32xf32>
    %62 = arith.divf %60, %61 : vector<1x32xf32>
    %63 = arith.mulf %54, %37 : vector<1x32xf32>
    %64 = arith.mulf %48, %56 : vector<1x32xf32>
    %65 = arith.addf %63, %64 : vector<1x32xf32>
    %66 = math.tanh %65 : vector<1x32xf32>
    %67 = arith.mulf %62, %66 : vector<1x32xf32>
    %68 = vector.extract_strided_slice %9 {offsets = [2, 0], sizes = [1, 128], strides = [1, 1]} : vector<8x128xf32> to vector<1x128xf32>
    %cst_22 = arith.constant dense<0.000000e+00> : vector<1x128xf32>
    %69 = tpu.matmul %67, %1, %cst_22 {dimension_numbers = #tpu.dot_dimension_numbers<[1], [0], [0], [1], [0, 0, 1, 1], [], []>} : vector<1x32xf32>, vector<32x128xf32>, vector<1x128xf32> -> vector<1x128xf32>
    %70 = arith.addf %68, %69 : vector<1x128xf32>
    %71 = vector.extract_strided_slice %70 {offsets = [0, 0], sizes = [1, 32], strides = [1, 1]} : vector<1x128xf32> to vector<1x32xf32>
    %72 = arith.negf %71 : vector<1x32xf32>
    %73 = math.exp %72 : vector<1x32xf32>
    %cst_23 = arith.constant 1.000000e+00 : f32
    %74 = vector.broadcast %cst_23 : f32 to vector<1x32xf32>
    %75 = arith.addf %74, %73 : vector<1x32xf32>
    %76 = arith.divf %74, %75 : vector<1x32xf32>
    %77 = vector.extract_strided_slice %70 {offsets = [0, 32], sizes = [1, 32], strides = [1, 1]} : vector<1x128xf32> to vector<1x32xf32>
    %78 = arith.negf %77 : vector<1x32xf32>
    %79 = math.exp %78 : vector<1x32xf32>
    %cst_24 = arith.constant 1.000000e+00 : f32
    %80 = vector.broadcast %cst_24 : f32 to vector<1x32xf32>
    %81 = arith.addf %80, %79 : vector<1x32xf32>
    %82 = arith.divf %80, %81 : vector<1x32xf32>
    %83 = vector.extract_strided_slice %70 {offsets = [0, 64], sizes = [1, 32], strides = [1, 1]} : vector<1x128xf32> to vector<1x32xf32>
    %84 = math.tanh %83 : vector<1x32xf32>
    %85 = vector.extract_strided_slice %70 {offsets = [0, 96], sizes = [1, 32], strides = [1, 1]} : vector<1x128xf32> to vector<1x32xf32>
    %86 = arith.negf %85 : vector<1x32xf32>
    %87 = math.exp %86 : vector<1x32xf32>
    %cst_25 = arith.constant 1.000000e+00 : f32
    %88 = vector.broadcast %cst_25 : f32 to vector<1x32xf32>
    %89 = arith.addf %88, %87 : vector<1x32xf32>
    %90 = arith.divf %88, %89 : vector<1x32xf32>
    %91 = arith.mulf %82, %65 : vector<1x32xf32>
    %92 = arith.mulf %76, %84 : vector<1x32xf32>
    %93 = arith.addf %91, %92 : vector<1x32xf32>
    %94 = math.tanh %93 : vector<1x32xf32>
    %95 = arith.mulf %90, %94 : vector<1x32xf32>
    %96 = vector.extract_strided_slice %9 {offsets = [3, 0], sizes = [1, 128], strides = [1, 1]} : vector<8x128xf32> to vector<1x128xf32>
    %cst_26 = arith.constant dense<0.000000e+00> : vector<1x128xf32>
    %97 = tpu.matmul %95, %1, %cst_26 {dimension_numbers = #tpu.dot_dimension_numbers<[1], [0], [0], [1], [0, 0, 1, 1], [], []>} : vector<1x32xf32>, vector<32x128xf32>, vector<1x128xf32> -> vector<1x128xf32>
    %98 = arith.addf %96, %97 : vector<1x128xf32>
    %99 = vector.extract_strided_slice %98 {offsets = [0, 0], sizes = [1, 32], strides = [1, 1]} : vector<1x128xf32> to vector<1x32xf32>
    %100 = arith.negf %99 : vector<1x32xf32>
    %101 = math.exp %100 : vector<1x32xf32>
    %cst_27 = arith.constant 1.000000e+00 : f32
    %102 = vector.broadcast %cst_27 : f32 to vector<1x32xf32>
    %103 = arith.addf %102, %101 : vector<1x32xf32>
    %104 = arith.divf %102, %103 : vector<1x32xf32>
    %105 = vector.extract_strided_slice %98 {offsets = [0, 32], sizes = [1, 32], strides = [1, 1]} : vector<1x128xf32> to vector<1x32xf32>
    %106 = arith.negf %105 : vector<1x32xf32>
    %107 = math.exp %106 : vector<1x32xf32>
    %cst_28 = arith.constant 1.000000e+00 : f32
    %108 = vector.broadcast %cst_28 : f32 to vector<1x32xf32>
    %109 = arith.addf %108, %107 : vector<1x32xf32>
    %110 = arith.divf %108, %109 : vector<1x32xf32>
    %111 = vector.extract_strided_slice %98 {offsets = [0, 64], sizes = [1, 32], strides = [1, 1]} : vector<1x128xf32> to vector<1x32xf32>
    %112 = math.tanh %111 : vector<1x32xf32>
    %113 = vector.extract_strided_slice %98 {offsets = [0, 96], sizes = [1, 32], strides = [1, 1]} : vector<1x128xf32> to vector<1x32xf32>
    %114 = arith.negf %113 : vector<1x32xf32>
    %115 = math.exp %114 : vector<1x32xf32>
    %cst_29 = arith.constant 1.000000e+00 : f32
    %116 = vector.broadcast %cst_29 : f32 to vector<1x32xf32>
    %117 = arith.addf %116, %115 : vector<1x32xf32>
    %118 = arith.divf %116, %117 : vector<1x32xf32>
    %119 = arith.mulf %110, %93 : vector<1x32xf32>
    %120 = arith.mulf %104, %112 : vector<1x32xf32>
    %121 = arith.addf %119, %120 : vector<1x32xf32>
    %122 = math.tanh %121 : vector<1x32xf32>
    %123 = arith.mulf %118, %122 : vector<1x32xf32>
    %124 = vector.extract_strided_slice %9 {offsets = [4, 0], sizes = [1, 128], strides = [1, 1]} : vector<8x128xf32> to vector<1x128xf32>
    %cst_30 = arith.constant dense<0.000000e+00> : vector<1x128xf32>
    %125 = tpu.matmul %123, %1, %cst_30 {dimension_numbers = #tpu.dot_dimension_numbers<[1], [0], [0], [1], [0, 0, 1, 1], [], []>} : vector<1x32xf32>, vector<32x128xf32>, vector<1x128xf32> -> vector<1x128xf32>
    %126 = arith.addf %124, %125 : vector<1x128xf32>
    %127 = vector.extract_strided_slice %126 {offsets = [0, 0], sizes = [1, 32], strides = [1, 1]} : vector<1x128xf32> to vector<1x32xf32>
    %128 = arith.negf %127 : vector<1x32xf32>
    %129 = math.exp %128 : vector<1x32xf32>
    %cst_31 = arith.constant 1.000000e+00 : f32
    %130 = vector.broadcast %cst_31 : f32 to vector<1x32xf32>
    %131 = arith.addf %130, %129 : vector<1x32xf32>
    %132 = arith.divf %130, %131 : vector<1x32xf32>
    %133 = vector.extract_strided_slice %126 {offsets = [0, 32], sizes = [1, 32], strides = [1, 1]} : vector<1x128xf32> to vector<1x32xf32>
    %134 = arith.negf %133 : vector<1x32xf32>
    %135 = math.exp %134 : vector<1x32xf32>
    %cst_32 = arith.constant 1.000000e+00 : f32
    %136 = vector.broadcast %cst_32 : f32 to vector<1x32xf32>
    %137 = arith.addf %136, %135 : vector<1x32xf32>
    %138 = arith.divf %136, %137 : vector<1x32xf32>
    %139 = vector.extract_strided_slice %126 {offsets = [0, 64], sizes = [1, 32], strides = [1, 1]} : vector<1x128xf32> to vector<1x32xf32>
    %140 = math.tanh %139 : vector<1x32xf32>
    %141 = vector.extract_strided_slice %126 {offsets = [0, 96], sizes = [1, 32], strides = [1, 1]} : vector<1x128xf32> to vector<1x32xf32>
    %142 = arith.negf %141 : vector<1x32xf32>
    %143 = math.exp %142 : vector<1x32xf32>
    %cst_33 = arith.constant 1.000000e+00 : f32
    %144 = vector.broadcast %cst_33 : f32 to vector<1x32xf32>
    %145 = arith.addf %144, %143 : vector<1x32xf32>
    %146 = arith.divf %144, %145 : vector<1x32xf32>
    %147 = arith.mulf %138, %121 : vector<1x32xf32>
    %148 = arith.mulf %132, %140 : vector<1x32xf32>
    %149 = arith.addf %147, %148 : vector<1x32xf32>
    %150 = math.tanh %149 : vector<1x32xf32>
    %151 = arith.mulf %146, %150 : vector<1x32xf32>
    %152 = vector.extract_strided_slice %9 {offsets = [5, 0], sizes = [1, 128], strides = [1, 1]} : vector<8x128xf32> to vector<1x128xf32>
    %cst_34 = arith.constant dense<0.000000e+00> : vector<1x128xf32>
    %153 = tpu.matmul %151, %1, %cst_34 {dimension_numbers = #tpu.dot_dimension_numbers<[1], [0], [0], [1], [0, 0, 1, 1], [], []>} : vector<1x32xf32>, vector<32x128xf32>, vector<1x128xf32> -> vector<1x128xf32>
    %154 = arith.addf %152, %153 : vector<1x128xf32>
    %155 = vector.extract_strided_slice %154 {offsets = [0, 0], sizes = [1, 32], strides = [1, 1]} : vector<1x128xf32> to vector<1x32xf32>
    %156 = arith.negf %155 : vector<1x32xf32>
    %157 = math.exp %156 : vector<1x32xf32>
    %cst_35 = arith.constant 1.000000e+00 : f32
    %158 = vector.broadcast %cst_35 : f32 to vector<1x32xf32>
    %159 = arith.addf %158, %157 : vector<1x32xf32>
    %160 = arith.divf %158, %159 : vector<1x32xf32>
    %161 = vector.extract_strided_slice %154 {offsets = [0, 32], sizes = [1, 32], strides = [1, 1]} : vector<1x128xf32> to vector<1x32xf32>
    %162 = arith.negf %161 : vector<1x32xf32>
    %163 = math.exp %162 : vector<1x32xf32>
    %cst_36 = arith.constant 1.000000e+00 : f32
    %164 = vector.broadcast %cst_36 : f32 to vector<1x32xf32>
    %165 = arith.addf %164, %163 : vector<1x32xf32>
    %166 = arith.divf %164, %165 : vector<1x32xf32>
    %167 = vector.extract_strided_slice %154 {offsets = [0, 64], sizes = [1, 32], strides = [1, 1]} : vector<1x128xf32> to vector<1x32xf32>
    %168 = math.tanh %167 : vector<1x32xf32>
    %169 = vector.extract_strided_slice %154 {offsets = [0, 96], sizes = [1, 32], strides = [1, 1]} : vector<1x128xf32> to vector<1x32xf32>
    %170 = arith.negf %169 : vector<1x32xf32>
    %171 = math.exp %170 : vector<1x32xf32>
    %cst_37 = arith.constant 1.000000e+00 : f32
    %172 = vector.broadcast %cst_37 : f32 to vector<1x32xf32>
    %173 = arith.addf %172, %171 : vector<1x32xf32>
    %174 = arith.divf %172, %173 : vector<1x32xf32>
    %175 = arith.mulf %166, %149 : vector<1x32xf32>
    %176 = arith.mulf %160, %168 : vector<1x32xf32>
    %177 = arith.addf %175, %176 : vector<1x32xf32>
    %178 = math.tanh %177 : vector<1x32xf32>
    %179 = arith.mulf %174, %178 : vector<1x32xf32>
    %180 = vector.extract_strided_slice %9 {offsets = [6, 0], sizes = [1, 128], strides = [1, 1]} : vector<8x128xf32> to vector<1x128xf32>
    %cst_38 = arith.constant dense<0.000000e+00> : vector<1x128xf32>
    %181 = tpu.matmul %179, %1, %cst_38 {dimension_numbers = #tpu.dot_dimension_numbers<[1], [0], [0], [1], [0, 0, 1, 1], [], []>} : vector<1x32xf32>, vector<32x128xf32>, vector<1x128xf32> -> vector<1x128xf32>
    %182 = arith.addf %180, %181 : vector<1x128xf32>
    %183 = vector.extract_strided_slice %182 {offsets = [0, 0], sizes = [1, 32], strides = [1, 1]} : vector<1x128xf32> to vector<1x32xf32>
    %184 = arith.negf %183 : vector<1x32xf32>
    %185 = math.exp %184 : vector<1x32xf32>
    %cst_39 = arith.constant 1.000000e+00 : f32
    %186 = vector.broadcast %cst_39 : f32 to vector<1x32xf32>
    %187 = arith.addf %186, %185 : vector<1x32xf32>
    %188 = arith.divf %186, %187 : vector<1x32xf32>
    %189 = vector.extract_strided_slice %182 {offsets = [0, 32], sizes = [1, 32], strides = [1, 1]} : vector<1x128xf32> to vector<1x32xf32>
    %190 = arith.negf %189 : vector<1x32xf32>
    %191 = math.exp %190 : vector<1x32xf32>
    %cst_40 = arith.constant 1.000000e+00 : f32
    %192 = vector.broadcast %cst_40 : f32 to vector<1x32xf32>
    %193 = arith.addf %192, %191 : vector<1x32xf32>
    %194 = arith.divf %192, %193 : vector<1x32xf32>
    %195 = vector.extract_strided_slice %182 {offsets = [0, 64], sizes = [1, 32], strides = [1, 1]} : vector<1x128xf32> to vector<1x32xf32>
    %196 = math.tanh %195 : vector<1x32xf32>
    %197 = vector.extract_strided_slice %182 {offsets = [0, 96], sizes = [1, 32], strides = [1, 1]} : vector<1x128xf32> to vector<1x32xf32>
    %198 = arith.negf %197 : vector<1x32xf32>
    %199 = math.exp %198 : vector<1x32xf32>
    %cst_41 = arith.constant 1.000000e+00 : f32
    %200 = vector.broadcast %cst_41 : f32 to vector<1x32xf32>
    %201 = arith.addf %200, %199 : vector<1x32xf32>
    %202 = arith.divf %200, %201 : vector<1x32xf32>
    %203 = arith.mulf %194, %177 : vector<1x32xf32>
    %204 = arith.mulf %188, %196 : vector<1x32xf32>
    %205 = arith.addf %203, %204 : vector<1x32xf32>
    %206 = math.tanh %205 : vector<1x32xf32>
    %207 = arith.mulf %202, %206 : vector<1x32xf32>
    %208 = vector.extract_strided_slice %9 {offsets = [7, 0], sizes = [1, 128], strides = [1, 1]} : vector<8x128xf32> to vector<1x128xf32>
    %cst_42 = arith.constant dense<0.000000e+00> : vector<1x128xf32>
    %209 = tpu.matmul %207, %1, %cst_42 {dimension_numbers = #tpu.dot_dimension_numbers<[1], [0], [0], [1], [0, 0, 1, 1], [], []>} : vector<1x32xf32>, vector<32x128xf32>, vector<1x128xf32> -> vector<1x128xf32>
    %210 = arith.addf %208, %209 : vector<1x128xf32>
    %211 = vector.extract_strided_slice %210 {offsets = [0, 0], sizes = [1, 32], strides = [1, 1]} : vector<1x128xf32> to vector<1x32xf32>
    %212 = arith.negf %211 : vector<1x32xf32>
    %213 = math.exp %212 : vector<1x32xf32>
    %cst_43 = arith.constant 1.000000e+00 : f32
    %214 = vector.broadcast %cst_43 : f32 to vector<1x32xf32>
    %215 = arith.addf %214, %213 : vector<1x32xf32>
    %216 = arith.divf %214, %215 : vector<1x32xf32>
    %217 = vector.extract_strided_slice %210 {offsets = [0, 32], sizes = [1, 32], strides = [1, 1]} : vector<1x128xf32> to vector<1x32xf32>
    %218 = arith.negf %217 : vector<1x32xf32>
    %219 = math.exp %218 : vector<1x32xf32>
    %cst_44 = arith.constant 1.000000e+00 : f32
    %220 = vector.broadcast %cst_44 : f32 to vector<1x32xf32>
    %221 = arith.addf %220, %219 : vector<1x32xf32>
    %222 = arith.divf %220, %221 : vector<1x32xf32>
    %223 = vector.extract_strided_slice %210 {offsets = [0, 64], sizes = [1, 32], strides = [1, 1]} : vector<1x128xf32> to vector<1x32xf32>
    %224 = math.tanh %223 : vector<1x32xf32>
    %225 = vector.extract_strided_slice %210 {offsets = [0, 96], sizes = [1, 32], strides = [1, 1]} : vector<1x128xf32> to vector<1x32xf32>
    %226 = arith.negf %225 : vector<1x32xf32>
    %227 = math.exp %226 : vector<1x32xf32>
    %cst_45 = arith.constant 1.000000e+00 : f32
    %228 = vector.broadcast %cst_45 : f32 to vector<1x32xf32>
    %229 = arith.addf %228, %227 : vector<1x32xf32>
    %230 = arith.divf %228, %229 : vector<1x32xf32>
    %231 = arith.mulf %222, %205 : vector<1x32xf32>
    %232 = arith.mulf %216, %224 : vector<1x32xf32>
    %233 = arith.addf %231, %232 : vector<1x32xf32>
    %234 = math.tanh %233 : vector<1x32xf32>
    %235 = arith.mulf %230, %234 : vector<1x32xf32>
    %236 = tpu.concatenate %39, %67, %95, %123, %151, %179, %207, %235 in 0 : vector<1x32xf32>, vector<1x32xf32>, vector<1x32xf32>, vector<1x32xf32>, vector<1x32xf32>, vector<1x32xf32>, vector<1x32xf32>, vector<1x32xf32> -> vector<8x32xf32>
    %cst_46 = arith.constant dense<0.000000e+00> : vector<8x2xf32>
    %237 = tpu.matmul %236, %3, %cst_46 {dimension_numbers = #tpu.dot_dimension_numbers<[1], [0], [0], [1], [0, 0, 1, 1], [], []>} : vector<8x32xf32>, vector<32x2xf32>, vector<8x2xf32> -> vector<8x2xf32>
    %238 = vector.broadcast %4 : vector<1x2xf32> to vector<8x2xf32>
    %239 = arith.addf %237, %238 : vector<8x2xf32>
    %c0_47 = arith.constant 0 : index
    %c0_48 = arith.constant 0 : index
    %c0_49 = arith.constant 0 : index
    %240 = vector.load %arg7[%c0_47, %c0_48, %c0_49] : memref<2x8x2xf32, #tpu.memory_space<vmem>>, vector<1x8x2xf32>
    %241 = vector.shape_cast %240 : vector<1x8x2xf32> to vector<8x2xf32>
    %242 = vector.shape_cast %239 : vector<8x2xf32> to vector<1x8x2xf32>
    tpu.vector_store %arg7[%c0_47, %c0_48, %c0_49], %242 {strides = array<i32>} : memref<2x8x2xf32, #tpu.memory_space<vmem>>, vector<1x8x2xf32>,
    %c1 = arith.constant 1 : index
    %c0_50 = arith.constant 0 : index
    %c0_51 = arith.constant 0 : index
    %243 = vector.load %arg1[%c1, %c0_50, %c0_51] : memref<2x8x32xf32, #tpu.memory_space<vmem>>, vector<1x8x32xf32>
    %244 = vector.shape_cast %243 : vector<1x8x32xf32> to vector<8x32xf32>
    %cst_52 = arith.constant dense<0.000000e+00> : vector<8x128xf32>
    %245 = tpu.matmul %244, %0, %cst_52 {dimension_numbers = #tpu.dot_dimension_numbers<[1], [0], [0], [1], [0, 0, 1, 1], [], []>} : vector<8x32xf32>, vector<32x128xf32>, vector<8x128xf32> -> vector<8x128xf32>
    %246 = vector.broadcast %2 : vector<1x128xf32> to vector<8x128xf32>
    %247 = arith.addf %245, %246 : vector<8x128xf32>
    %cst_53 = arith.constant 0.000000e+00 : f32
    %248 = vector.broadcast %cst_53 : f32 to vector<1x32xf32>
    %cst_54 = arith.constant 0.000000e+00 : f32
    %249 = vector.broadcast %cst_54 : f32 to vector<1x32xf32>
    %250 = vector.extract_strided_slice %247 {offsets = [0, 0], sizes = [1, 128], strides = [1, 1]} : vector<8x128xf32> to vector<1x128xf32>
    %cst_55 = arith.constant dense<0.000000e+00> : vector<1x128xf32>
    %251 = tpu.matmul %248, %1, %cst_55 {dimension_numbers = #tpu.dot_dimension_numbers<[1], [0], [0], [1], [0, 0, 1, 1], [], []>} : vector<1x32xf32>, vector<32x128xf32>, vector<1x128xf32> -> vector<1x128xf32>
    %252 = arith.addf %250, %251 : vector<1x128xf32>
    %253 = vector.extract_strided_slice %252 {offsets = [0, 0], sizes = [1, 32], strides = [1, 1]} : vector<1x128xf32> to vector<1x32xf32>
    %254 = arith.negf %253 : vector<1x32xf32>
    %255 = math.exp %254 : vector<1x32xf32>
    %cst_56 = arith.constant 1.000000e+00 : f32
    %256 = vector.broadcast %cst_56 : f32 to vector<1x32xf32>
    %257 = arith.addf %256, %255 : vector<1x32xf32>
    %258 = arith.divf %256, %257 : vector<1x32xf32>
    %259 = vector.extract_strided_slice %252 {offsets = [0, 32], sizes = [1, 32], strides = [1, 1]} : vector<1x128xf32> to vector<1x32xf32>
    %260 = arith.negf %259 : vector<1x32xf32>
    %261 = math.exp %260 : vector<1x32xf32>
    %cst_57 = arith.constant 1.000000e+00 : f32
    %262 = vector.broadcast %cst_57 : f32 to vector<1x32xf32>
    %263 = arith.addf %262, %261 : vector<1x32xf32>
    %264 = arith.divf %262, %263 : vector<1x32xf32>
    %265 = vector.extract_strided_slice %252 {offsets = [0, 64], sizes = [1, 32], strides = [1, 1]} : vector<1x128xf32> to vector<1x32xf32>
    %266 = math.tanh %265 : vector<1x32xf32>
    %267 = vector.extract_strided_slice %252 {offsets = [0, 96], sizes = [1, 32], strides = [1, 1]} : vector<1x128xf32> to vector<1x32xf32>
    %268 = arith.negf %267 : vector<1x32xf32>
    %269 = math.exp %268 : vector<1x32xf32>
    %cst_58 = arith.constant 1.000000e+00 : f32
    %270 = vector.broadcast %cst_58 : f32 to vector<1x32xf32>
    %271 = arith.addf %270, %269 : vector<1x32xf32>
    %272 = arith.divf %270, %271 : vector<1x32xf32>
    %273 = arith.mulf %264, %249 : vector<1x32xf32>
    %274 = arith.mulf %258, %266 : vector<1x32xf32>
    %275 = arith.addf %273, %274 : vector<1x32xf32>
    %276 = math.tanh %275 : vector<1x32xf32>
    %277 = arith.mulf %272, %276 : vector<1x32xf32>
    %278 = vector.extract_strided_slice %247 {offsets = [1, 0], sizes = [1, 128], strides = [1, 1]} : vector<8x128xf32> to vector<1x128xf32>
    %cst_59 = arith.constant dense<0.000000e+00> : vector<1x128xf32>
    %279 = tpu.matmul %277, %1, %cst_59 {dimension_numbers = #tpu.dot_dimension_numbers<[1], [0], [0], [1], [0, 0, 1, 1], [], []>} : vector<1x32xf32>, vector<32x128xf32>, vector<1x128xf32> -> vector<1x128xf32>
    %280 = arith.addf %278, %279 : vector<1x128xf32>
    %281 = vector.extract_strided_slice %280 {offsets = [0, 0], sizes = [1, 32], strides = [1, 1]} : vector<1x128xf32> to vector<1x32xf32>
    %282 = arith.negf %281 : vector<1x32xf32>
    %283 = math.exp %282 : vector<1x32xf32>
    %cst_60 = arith.constant 1.000000e+00 : f32
    %284 = vector.broadcast %cst_60 : f32 to vector<1x32xf32>
    %285 = arith.addf %284, %283 : vector<1x32xf32>
    %286 = arith.divf %284, %285 : vector<1x32xf32>
    %287 = vector.extract_strided_slice %280 {offsets = [0, 32], sizes = [1, 32], strides = [1, 1]} : vector<1x128xf32> to vector<1x32xf32>
    %288 = arith.negf %287 : vector<1x32xf32>
    %289 = math.exp %288 : vector<1x32xf32>
    %cst_61 = arith.constant 1.000000e+00 : f32
    %290 = vector.broadcast %cst_61 : f32 to vector<1x32xf32>
    %291 = arith.addf %290, %289 : vector<1x32xf32>
    %292 = arith.divf %290, %291 : vector<1x32xf32>
    %293 = vector.extract_strided_slice %280 {offsets = [0, 64], sizes = [1, 32], strides = [1, 1]} : vector<1x128xf32> to vector<1x32xf32>
    %294 = math.tanh %293 : vector<1x32xf32>
    %295 = vector.extract_strided_slice %280 {offsets = [0, 96], sizes = [1, 32], strides = [1, 1]} : vector<1x128xf32> to vector<1x32xf32>
    %296 = arith.negf %295 : vector<1x32xf32>
    %297 = math.exp %296 : vector<1x32xf32>
    %cst_62 = arith.constant 1.000000e+00 : f32
    %298 = vector.broadcast %cst_62 : f32 to vector<1x32xf32>
    %299 = arith.addf %298, %297 : vector<1x32xf32>
    %300 = arith.divf %298, %299 : vector<1x32xf32>
    %301 = arith.mulf %292, %275 : vector<1x32xf32>
    %302 = arith.mulf %286, %294 : vector<1x32xf32>
    %303 = arith.addf %301, %302 : vector<1x32xf32>
    %304 = math.tanh %303 : vector<1x32xf32>
    %305 = arith.mulf %300, %304 : vector<1x32xf32>
    %306 = vector.extract_strided_slice %247 {offsets = [2, 0], sizes = [1, 128], strides = [1, 1]} : vector<8x128xf32> to vector<1x128xf32>
    %cst_63 = arith.constant dense<0.000000e+00> : vector<1x128xf32>
    %307 = tpu.matmul %305, %1, %cst_63 {dimension_numbers = #tpu.dot_dimension_numbers<[1], [0], [0], [1], [0, 0, 1, 1], [], []>} : vector<1x32xf32>, vector<32x128xf32>, vector<1x128xf32> -> vector<1x128xf32>
    %308 = arith.addf %306, %307 : vector<1x128xf32>
    %309 = vector.extract_strided_slice %308 {offsets = [0, 0], sizes = [1, 32], strides = [1, 1]} : vector<1x128xf32> to vector<1x32xf32>
    %310 = arith.negf %309 : vector<1x32xf32>
    %311 = math.exp %310 : vector<1x32xf32>
    %cst_64 = arith.constant 1.000000e+00 : f32
    %312 = vector.broadcast %cst_64 : f32 to vector<1x32xf32>
    %313 = arith.addf %312, %311 : vector<1x32xf32>
    %314 = arith.divf %312, %313 : vector<1x32xf32>
    %315 = vector.extract_strided_slice %308 {offsets = [0, 32], sizes = [1, 32], strides = [1, 1]} : vector<1x128xf32> to vector<1x32xf32>
    %316 = arith.negf %315 : vector<1x32xf32>
    %317 = math.exp %316 : vector<1x32xf32>
    %cst_65 = arith.constant 1.000000e+00 : f32
    %318 = vector.broadcast %cst_65 : f32 to vector<1x32xf32>
    %319 = arith.addf %318, %317 : vector<1x32xf32>
    %320 = arith.divf %318, %319 : vector<1x32xf32>
    %321 = vector.extract_strided_slice %308 {offsets = [0, 64], sizes = [1, 32], strides = [1, 1]} : vector<1x128xf32> to vector<1x32xf32>
    %322 = math.tanh %321 : vector<1x32xf32>
    %323 = vector.extract_strided_slice %308 {offsets = [0, 96], sizes = [1, 32], strides = [1, 1]} : vector<1x128xf32> to vector<1x32xf32>
    %324 = arith.negf %323 : vector<1x32xf32>
    %325 = math.exp %324 : vector<1x32xf32>
    %cst_66 = arith.constant 1.000000e+00 : f32
    %326 = vector.broadcast %cst_66 : f32 to vector<1x32xf32>
    %327 = arith.addf %326, %325 : vector<1x32xf32>
    %328 = arith.divf %326, %327 : vector<1x32xf32>
    %329 = arith.mulf %320, %303 : vector<1x32xf32>
    %330 = arith.mulf %314, %322 : vector<1x32xf32>
    %331 = arith.addf %329, %330 : vector<1x32xf32>
    %332 = math.tanh %331 : vector<1x32xf32>
    %333 = arith.mulf %328, %332 : vector<1x32xf32>
    %334 = vector.extract_strided_slice %247 {offsets = [3, 0], sizes = [1, 128], strides = [1, 1]} : vector<8x128xf32> to vector<1x128xf32>
    %cst_67 = arith.constant dense<0.000000e+00> : vector<1x128xf32>
    %335 = tpu.matmul %333, %1, %cst_67 {dimension_numbers = #tpu.dot_dimension_numbers<[1], [0], [0], [1], [0, 0, 1, 1], [], []>} : vector<1x32xf32>, vector<32x128xf32>, vector<1x128xf32> -> vector<1x128xf32>
    %336 = arith.addf %334, %335 : vector<1x128xf32>
    %337 = vector.extract_strided_slice %336 {offsets = [0, 0], sizes = [1, 32], strides = [1, 1]} : vector<1x128xf32> to vector<1x32xf32>
    %338 = arith.negf %337 : vector<1x32xf32>
    %339 = math.exp %338 : vector<1x32xf32>
    %cst_68 = arith.constant 1.000000e+00 : f32
    %340 = vector.broadcast %cst_68 : f32 to vector<1x32xf32>
    %341 = arith.addf %340, %339 : vector<1x32xf32>
    %342 = arith.divf %340, %341 : vector<1x32xf32>
    %343 = vector.extract_strided_slice %336 {offsets = [0, 32], sizes = [1, 32], strides = [1, 1]} : vector<1x128xf32> to vector<1x32xf32>
    %344 = arith.negf %343 : vector<1x32xf32>
    %345 = math.exp %344 : vector<1x32xf32>
    %cst_69 = arith.constant 1.000000e+00 : f32
    %346 = vector.broadcast %cst_69 : f32 to vector<1x32xf32>
    %347 = arith.addf %346, %345 : vector<1x32xf32>
    %348 = arith.divf %346, %347 : vector<1x32xf32>
    %349 = vector.extract_strided_slice %336 {offsets = [0, 64], sizes = [1, 32], strides = [1, 1]} : vector<1x128xf32> to vector<1x32xf32>
    %350 = math.tanh %349 : vector<1x32xf32>
    %351 = vector.extract_strided_slice %336 {offsets = [0, 96], sizes = [1, 32], strides = [1, 1]} : vector<1x128xf32> to vector<1x32xf32>
    %352 = arith.negf %351 : vector<1x32xf32>
    %353 = math.exp %352 : vector<1x32xf32>
    %cst_70 = arith.constant 1.000000e+00 : f32
    %354 = vector.broadcast %cst_70 : f32 to vector<1x32xf32>
    %355 = arith.addf %354, %353 : vector<1x32xf32>
    %356 = arith.divf %354, %355 : vector<1x32xf32>
    %357 = arith.mulf %348, %331 : vector<1x32xf32>
    %358 = arith.mulf %342, %350 : vector<1x32xf32>
    %359 = arith.addf %357, %358 : vector<1x32xf32>
    %360 = math.tanh %359 : vector<1x32xf32>
    %361 = arith.mulf %356, %360 : vector<1x32xf32>
    %362 = vector.extract_strided_slice %247 {offsets = [4, 0], sizes = [1, 128], strides = [1, 1]} : vector<8x128xf32> to vector<1x128xf32>
    %cst_71 = arith.constant dense<0.000000e+00> : vector<1x128xf32>
    %363 = tpu.matmul %361, %1, %cst_71 {dimension_numbers = #tpu.dot_dimension_numbers<[1], [0], [0], [1], [0, 0, 1, 1], [], []>} : vector<1x32xf32>, vector<32x128xf32>, vector<1x128xf32> -> vector<1x128xf32>
    %364 = arith.addf %362, %363 : vector<1x128xf32>
    %365 = vector.extract_strided_slice %364 {offsets = [0, 0], sizes = [1, 32], strides = [1, 1]} : vector<1x128xf32> to vector<1x32xf32>
    %366 = arith.negf %365 : vector<1x32xf32>
    %367 = math.exp %366 : vector<1x32xf32>
    %cst_72 = arith.constant 1.000000e+00 : f32
    %368 = vector.broadcast %cst_72 : f32 to vector<1x32xf32>
    %369 = arith.addf %368, %367 : vector<1x32xf32>
    %370 = arith.divf %368, %369 : vector<1x32xf32>
    %371 = vector.extract_strided_slice %364 {offsets = [0, 32], sizes = [1, 32], strides = [1, 1]} : vector<1x128xf32> to vector<1x32xf32>
    %372 = arith.negf %371 : vector<1x32xf32>
    %373 = math.exp %372 : vector<1x32xf32>
    %cst_73 = arith.constant 1.000000e+00 : f32
    %374 = vector.broadcast %cst_73 : f32 to vector<1x32xf32>
    %375 = arith.addf %374, %373 : vector<1x32xf32>
    %376 = arith.divf %374, %375 : vector<1x32xf32>
    %377 = vector.extract_strided_slice %364 {offsets = [0, 64], sizes = [1, 32], strides = [1, 1]} : vector<1x128xf32> to vector<1x32xf32>
    %378 = math.tanh %377 : vector<1x32xf32>
    %379 = vector.extract_strided_slice %364 {offsets = [0, 96], sizes = [1, 32], strides = [1, 1]} : vector<1x128xf32> to vector<1x32xf32>
    %380 = arith.negf %379 : vector<1x32xf32>
    %381 = math.exp %380 : vector<1x32xf32>
    %cst_74 = arith.constant 1.000000e+00 : f32
    %382 = vector.broadcast %cst_74 : f32 to vector<1x32xf32>
    %383 = arith.addf %382, %381 : vector<1x32xf32>
    %384 = arith.divf %382, %383 : vector<1x32xf32>
    %385 = arith.mulf %376, %359 : vector<1x32xf32>
    %386 = arith.mulf %370, %378 : vector<1x32xf32>
    %387 = arith.addf %385, %386 : vector<1x32xf32>
    %388 = math.tanh %387 : vector<1x32xf32>
    %389 = arith.mulf %384, %388 : vector<1x32xf32>
    %390 = vector.extract_strided_slice %247 {offsets = [5, 0], sizes = [1, 128], strides = [1, 1]} : vector<8x128xf32> to vector<1x128xf32>
    %cst_75 = arith.constant dense<0.000000e+00> : vector<1x128xf32>
    %391 = tpu.matmul %389, %1, %cst_75 {dimension_numbers = #tpu.dot_dimension_numbers<[1], [0], [0], [1], [0, 0, 1, 1], [], []>} : vector<1x32xf32>, vector<32x128xf32>, vector<1x128xf32> -> vector<1x128xf32>
    %392 = arith.addf %390, %391 : vector<1x128xf32>
    %393 = vector.extract_strided_slice %392 {offsets = [0, 0], sizes = [1, 32], strides = [1, 1]} : vector<1x128xf32> to vector<1x32xf32>
    %394 = arith.negf %393 : vector<1x32xf32>
    %395 = math.exp %394 : vector<1x32xf32>
    %cst_76 = arith.constant 1.000000e+00 : f32
    %396 = vector.broadcast %cst_76 : f32 to vector<1x32xf32>
    %397 = arith.addf %396, %395 : vector<1x32xf32>
    %398 = arith.divf %396, %397 : vector<1x32xf32>
    %399 = vector.extract_strided_slice %392 {offsets = [0, 32], sizes = [1, 32], strides = [1, 1]} : vector<1x128xf32> to vector<1x32xf32>
    %400 = arith.negf %399 : vector<1x32xf32>
    %401 = math.exp %400 : vector<1x32xf32>
    %cst_77 = arith.constant 1.000000e+00 : f32
    %402 = vector.broadcast %cst_77 : f32 to vector<1x32xf32>
    %403 = arith.addf %402, %401 : vector<1x32xf32>
    %404 = arith.divf %402, %403 : vector<1x32xf32>
    %405 = vector.extract_strided_slice %392 {offsets = [0, 64], sizes = [1, 32], strides = [1, 1]} : vector<1x128xf32> to vector<1x32xf32>
    %406 = math.tanh %405 : vector<1x32xf32>
    %407 = vector.extract_strided_slice %392 {offsets = [0, 96], sizes = [1, 32], strides = [1, 1]} : vector<1x128xf32> to vector<1x32xf32>
    %408 = arith.negf %407 : vector<1x32xf32>
    %409 = math.exp %408 : vector<1x32xf32>
    %cst_78 = arith.constant 1.000000e+00 : f32
    %410 = vector.broadcast %cst_78 : f32 to vector<1x32xf32>
    %411 = arith.addf %410, %409 : vector<1x32xf32>
    %412 = arith.divf %410, %411 : vector<1x32xf32>
    %413 = arith.mulf %404, %387 : vector<1x32xf32>
    %414 = arith.mulf %398, %406 : vector<1x32xf32>
    %415 = arith.addf %413, %414 : vector<1x32xf32>
    %416 = math.tanh %415 : vector<1x32xf32>
    %417 = arith.mulf %412, %416 : vector<1x32xf32>
    %418 = vector.extract_strided_slice %247 {offsets = [6, 0], sizes = [1, 128], strides = [1, 1]} : vector<8x128xf32> to vector<1x128xf32>
    %cst_79 = arith.constant dense<0.000000e+00> : vector<1x128xf32>
    %419 = tpu.matmul %417, %1, %cst_79 {dimension_numbers = #tpu.dot_dimension_numbers<[1], [0], [0], [1], [0, 0, 1, 1], [], []>} : vector<1x32xf32>, vector<32x128xf32>, vector<1x128xf32> -> vector<1x128xf32>
    %420 = arith.addf %418, %419 : vector<1x128xf32>
    %421 = vector.extract_strided_slice %420 {offsets = [0, 0], sizes = [1, 32], strides = [1, 1]} : vector<1x128xf32> to vector<1x32xf32>
    %422 = arith.negf %421 : vector<1x32xf32>
    %423 = math.exp %422 : vector<1x32xf32>
    %cst_80 = arith.constant 1.000000e+00 : f32
    %424 = vector.broadcast %cst_80 : f32 to vector<1x32xf32>
    %425 = arith.addf %424, %423 : vector<1x32xf32>
    %426 = arith.divf %424, %425 : vector<1x32xf32>
    %427 = vector.extract_strided_slice %420 {offsets = [0, 32], sizes = [1, 32], strides = [1, 1]} : vector<1x128xf32> to vector<1x32xf32>
    %428 = arith.negf %427 : vector<1x32xf32>
    %429 = math.exp %428 : vector<1x32xf32>
    %cst_81 = arith.constant 1.000000e+00 : f32
    %430 = vector.broadcast %cst_81 : f32 to vector<1x32xf32>
    %431 = arith.addf %430, %429 : vector<1x32xf32>
    %432 = arith.divf %430, %431 : vector<1x32xf32>
    %433 = vector.extract_strided_slice %420 {offsets = [0, 64], sizes = [1, 32], strides = [1, 1]} : vector<1x128xf32> to vector<1x32xf32>
    %434 = math.tanh %433 : vector<1x32xf32>
    %435 = vector.extract_strided_slice %420 {offsets = [0, 96], sizes = [1, 32], strides = [1, 1]} : vector<1x128xf32> to vector<1x32xf32>
    %436 = arith.negf %435 : vector<1x32xf32>
    %437 = math.exp %436 : vector<1x32xf32>
    %cst_82 = arith.constant 1.000000e+00 : f32
    %438 = vector.broadcast %cst_82 : f32 to vector<1x32xf32>
    %439 = arith.addf %438, %437 : vector<1x32xf32>
    %440 = arith.divf %438, %439 : vector<1x32xf32>
    %441 = arith.mulf %432, %415 : vector<1x32xf32>
    %442 = arith.mulf %426, %434 : vector<1x32xf32>
    %443 = arith.addf %441, %442 : vector<1x32xf32>
    %444 = math.tanh %443 : vector<1x32xf32>
    %445 = arith.mulf %440, %444 : vector<1x32xf32>
    %446 = vector.extract_strided_slice %247 {offsets = [7, 0], sizes = [1, 128], strides = [1, 1]} : vector<8x128xf32> to vector<1x128xf32>
    %cst_83 = arith.constant dense<0.000000e+00> : vector<1x128xf32>
    %447 = tpu.matmul %445, %1, %cst_83 {dimension_numbers = #tpu.dot_dimension_numbers<[1], [0], [0], [1], [0, 0, 1, 1], [], []>} : vector<1x32xf32>, vector<32x128xf32>, vector<1x128xf32> -> vector<1x128xf32>
    %448 = arith.addf %446, %447 : vector<1x128xf32>
    %449 = vector.extract_strided_slice %448 {offsets = [0, 0], sizes = [1, 32], strides = [1, 1]} : vector<1x128xf32> to vector<1x32xf32>
    %450 = arith.negf %449 : vector<1x32xf32>
    %451 = math.exp %450 : vector<1x32xf32>
    %cst_84 = arith.constant 1.000000e+00 : f32
    %452 = vector.broadcast %cst_84 : f32 to vector<1x32xf32>
    %453 = arith.addf %452, %451 : vector<1x32xf32>
    %454 = arith.divf %452, %453 : vector<1x32xf32>
    %455 = vector.extract_strided_slice %448 {offsets = [0, 32], sizes = [1, 32], strides = [1, 1]} : vector<1x128xf32> to vector<1x32xf32>
    %456 = arith.negf %455 : vector<1x32xf32>
    %457 = math.exp %456 : vector<1x32xf32>
    %cst_85 = arith.constant 1.000000e+00 : f32
    %458 = vector.broadcast %cst_85 : f32 to vector<1x32xf32>
    %459 = arith.addf %458, %457 : vector<1x32xf32>
    %460 = arith.divf %458, %459 : vector<1x32xf32>
    %461 = vector.extract_strided_slice %448 {offsets = [0, 64], sizes = [1, 32], strides = [1, 1]} : vector<1x128xf32> to vector<1x32xf32>
    %462 = math.tanh %461 : vector<1x32xf32>
    %463 = vector.extract_strided_slice %448 {offsets = [0, 96], sizes = [1, 32], strides = [1, 1]} : vector<1x128xf32> to vector<1x32xf32>
    %464 = arith.negf %463 : vector<1x32xf32>
    %465 = math.exp %464 : vector<1x32xf32>
    %cst_86 = arith.constant 1.000000e+00 : f32
    %466 = vector.broadcast %cst_86 : f32 to vector<1x32xf32>
    %467 = arith.addf %466, %465 : vector<1x32xf32>
    %468 = arith.divf %466, %467 : vector<1x32xf32>
    %469 = arith.mulf %460, %443 : vector<1x32xf32>
    %470 = arith.mulf %454, %462 : vector<1x32xf32>
    %471 = arith.addf %469, %470 : vector<1x32xf32>
    %472 = math.tanh %471 : vector<1x32xf32>
    %473 = arith.mulf %468, %472 : vector<1x32xf32>
    %474 = tpu.concatenate %277, %305, %333, %361, %389, %417, %445, %473 in 0 : vector<1x32xf32>, vector<1x32xf32>, vector<1x32xf32>, vector<1x32xf32>, vector<1x32xf32>, vector<1x32xf32>, vector<1x32xf32>, vector<1x32xf32> -> vector<8x32xf32>
    %cst_87 = arith.constant dense<0.000000e+00> : vector<8x2xf32>
    %475 = tpu.matmul %474, %3, %cst_87 {dimension_numbers = #tpu.dot_dimension_numbers<[1], [0], [0], [1], [0, 0, 1, 1], [], []>} : vector<8x32xf32>, vector<32x2xf32>, vector<8x2xf32> -> vector<8x2xf32>
    %476 = vector.broadcast %4 : vector<1x2xf32> to vector<8x2xf32>
    %477 = arith.addf %475, %476 : vector<8x2xf32>
    %c1_88 = arith.constant 1 : index
    %c0_89 = arith.constant 0 : index
    %c0_90 = arith.constant 0 : index
    %478 = vector.load %arg7[%c1_88, %c0_89, %c0_90] : memref<2x8x2xf32, #tpu.memory_space<vmem>>, vector<1x8x2xf32>
    %479 = vector.shape_cast %478 : vector<1x8x2xf32> to vector<8x2xf32>
    %480 = vector.shape_cast %477 : vector<8x2xf32> to vector<1x8x2xf32>
    tpu.vector_store %arg7[%c1_88, %c0_89, %c0_90], %480 {strides = array<i32>} : memref<2x8x2xf32, #tpu.memory_space<vmem>>, vector<1x8x2xf32>,
    return
  }
  func.func @transform_0(%arg0: i32) -> (i32, i32, i32) {
    %c0_i32 = arith.constant 0 : i32
    %c0_i32_0 = arith.constant 0 : i32
    %c0_i32_1 = arith.constant 0 : i32
    %c0_i32_2 = arith.constant 0 : i32
    return %c0_i32, %c0_i32_0, %c0_i32_1 : i32, i32, i32
  }
  func.func @transform_1(%arg0: i32) -> (i32, i32) {
    %c0_i32 = arith.constant 0 : i32
    %c0_i32_0 = arith.constant 0 : i32
    %c0_i32_1 = arith.constant 0 : i32
    return %c0_i32, %c0_i32_0 : i32, i32
  }
  func.func @transform_2(%arg0: i32) -> (i32, i32) {
    %c0_i32 = arith.constant 0 : i32
    %c0_i32_0 = arith.constant 0 : i32
    %c0_i32_1 = arith.constant 0 : i32
    return %c0_i32, %c0_i32_0 : i32, i32
  }
  func.func @transform_3(%arg0: i32) -> (i32, i32) {
    %c0_i32 = arith.constant 0 : i32
    %c0_i32_0 = arith.constant 0 : i32
    %c0_i32_1 = arith.constant 0 : i32
    return %c0_i32, %c0_i32_0 : i32, i32
  }
  func.func @transform_4(%arg0: i32) -> (i32, i32) {
    %c0_i32 = arith.constant 0 : i32
    %c0_i32_0 = arith.constant 0 : i32
    %c0_i32_1 = arith.constant 0 : i32
    return %c0_i32, %c0_i32_0 : i32, i32
  }
  func.func @transform_5(%arg0: i32) -> (i32, i32) {
    %c0_i32 = arith.constant 0 : i32
    %c0_i32_0 = arith.constant 0 : i32
    %c0_i32_1 = arith.constant 0 : i32
    return %c0_i32, %c0_i32_0 : i32, i32
  }
  func.func @transform_6(%arg0: i32) -> (i32, i32, i32) {
    %c0_i32 = arith.constant 0 : i32
    %c0_i32_0 = arith.constant 0 : i32
    %c0_i32_1 = arith.constant 0 : i32
    %c0_i32_2 = arith.constant 0 : i32
    return %c0_i32, %c0_i32_0, %c0_i32_1 : i32, i32, i32
  }
}

</mosaic_0001>

<bundles_post_ra>
// kernel: tpu_custom_call.1
= control target key start
LH: loop header
LB: loop body
LE: loop exit
PB: predicated region body
PF: predicated region fallthrough
CT: control target
= control target key end

     0   :  { %11 = vsyncpa [#allocation3], 0  ;;  %s3039_s0 = inlined_call_operand.hbm [shape: f32[2,8,32], index: 0, kind: input, shape index: {}]   ;;  %s3040_s1 = inlined_call_operand.vmem [shape: f32[32,128], index: 1, kind: input, shape index: {}]   ;;  %s3041_s2 = inlined_call_operand.hbm [shape: f32[32,128], index: 2, kind: input, shape index: {}]   ;;  %s3042_s3 = inlined_call_operand.vmem [shape: f32[1,128], index: 3, kind: input, shape index: {}]   ;;  %s3043_s4 = inlined_call_operand.vmem [shape: f32[32,2], index: 4, kind: input, shape index: {}]   ;;  %s3044_s5 = inlined_call_operand.vmem [shape: f32[1,2], index: 5, kind: input, shape index: {}]   ;;  %s3045_s6 = inlined_call_operand.vmem [shape: f32[2,8,2], index: 6, kind: output, shape index: {}]  }
   0x1   :  { %12 = vsyncpa [#allocation5], 0  ;;  %s2667_s21 = smov [#allocation2]   ;;  %s2619_s25 = scalar_lea.hbm %s3039_s0, 256 }
   0x2   :  { %s18_s22 = sshll.u32 %s2667_s21, 4  ;;  %p2620_p0 = scmp.ne.s32.totalorder %s3039_s0, %s2619_s25  ;;  %s19_s22 = int_to_ptr.vmem [resolvable:$true] %s18_s22 }
   0x3   :  { %p2623_p1 = scmp.lt.u32.totalorder %s2619_s25, %s3039_s0 }
   0x5   :  { %p2625_p2 = pnand %p2623_p1, %p2620_p0 }
   0x7   :  { %2628 = shalt.err (!%p2625_p2)
}
   0x8   :  { %s2629_s30 = scalar_lea.vmem %s19_s22, 256  ;;  %p2634_p4 = scmp.lt.s32.totalorder %s19_s22, %s19_s22 }
   0x9   :  { %p2630_p3 = scmp.ne.s32.totalorder %s19_s22, %s2629_s30  ;;  %p2635_p5 = scmp.lt.s32.totalorder %s2629_s30, %s2629_s30 }
   0xb   :  { %p2636_p6 = por %p2635_p5, %p2634_p4 }
   0xd   :  { %p2637_p7 = pnand %p2636_p6, %p2630_p3 }
   0xf   :  { %2640 = shalt.err (!%p2637_p7)
}
  0x10   :  { %s2668_s7 = smov 128   ;;  %s2669_s8 = smov 8  }
  0x11   :  { %24 = dma.hbm_to_vmem [thread:$0]  %s3039_s0, 256, %s19_s22, [#allocation3], %s2668_s7, %s2668_s7, %s2669_s8  }
  0x12   :  { %s2670_s11 = smov [#allocation4]   ;;  %s2641_s15 = scalar_lea.hbm %s3041_s2, 512 }
  0x13   :  { %s32_s12 = sshll.u32 %s2670_s11, 4  ;;  %p2642_p8 = scmp.ne.s32.totalorder %s3041_s2, %s2641_s15  ;;  %s33_s12 = int_to_ptr.vmem [resolvable:$true] %s32_s12 }
  0x14   :  { %p2645_p9 = scmp.lt.u32.totalorder %s2641_s15, %s3041_s2 }
  0x16   :  { %p2647_p10 = pnand %p2645_p9, %p2642_p8 }
  0x18   :  { %2650 = shalt.err (!%p2647_p10)
}
  0x19   :  { %s2651_s20 = scalar_lea.vmem %s33_s12, 512  ;;  %p2656_p12 = scmp.lt.s32.totalorder %s33_s12, %s33_s12 }
  0x1a   :  { %p2652_p11 = scmp.ne.s32.totalorder %s33_s12, %s2651_s20  ;;  %p2657_p13 = scmp.lt.s32.totalorder %s2651_s20, %s2651_s20 }
  0x1c   :  { %p2658_p0 = por %p2657_p13, %p2656_p12 }
  0x1e   :  { %p2659_p1 = pnand %p2658_p0, %p2652_p11 }
  0x20   :  { %2662 = shalt.err (!%p2659_p1)
}
  0x21   :  { %38 = dma.hbm_to_vmem [thread:$0]  %s3041_s2, 512, %s33_s12, [#allocation5], %s2668_s7, %s2668_s7, %s2669_s8  }
  0x22   :  { %2663 = dma.done.wait [#allocation3], 256  }
  0x23   :  { %2664 = vsyncadd [#allocation3], 4294967040 }
  0x24   :  { %2665 = dma.done.wait [#allocation5], 512  }
  0x25   :  { %2666 = vsyncadd [#allocation5], 4294966784  ;;  %v2671_v0 = vmov 0.0|0.0   ;;  %vm2672_vm0 = vmmov 0   ;;  %v2673_v1 = vmov 0.0   ;;  %v51_v2 = vld [vmem:[%s3040_s1] sm:$0xff] }
  0x26   :  { %2368 = vmatprep.subr.bf16.mxu0 %v2671_v0  ;;  %2374 = vmatprep.subr.bf16.mxu1 %v2671_v0  ;;  %v52_v3 = vld [vmem:[%s3040_s1 + $0x8] sm:$0xff]  ;;  %v55_v4 = vld [vmem:[#allocation4] sm:$0xff]  ;;  %v56_v6 = vld [vmem:[#allocation4 + $0x8] sm:$0xff]  ;;  %vm72_vm1 = vcmask 261120   ;;  %s2674_s30 = smov 64   ;;  %vm992_vm2 = vcmask 1040384  }
  0x27   :  { %2167 = vmatprep.mubr.msk.f32.mxu0 %vm2672_vm0, %v2673_v1  ;;  %2178 = vmatprep.mubr.msk.f32.mxu1 %vm2672_vm0, %v2673_v1  ;;  %v2747_v5 = vpack.c.bf16 %v52_v3, %v51_v2  ;;  %v53_v7 = vld [vmem:[%s3040_s1 + $0x10] sm:$0xff]  ;;  %v54_v8 = vld [vmem:[%s3040_s1 + $0x18] sm:$0xff]  ;;  %v2755_v9 = vpack.c.bf16 %v56_v6, %v55_v4  ;;  %v57_v10 = vld [vmem:[#allocation4 + $0x10] sm:$0xff]  ;;  %vm994_vm3 = vcmask 1041408   ;;  %vm996_vm4 = vcmask 1042432  }
  0x28   :  { %v58_v11 = vld [vmem:[#allocation4 + $0x18] sm:$0xff]  ;;  %v2758_v12 = vpack.c.bf16 %v54_v8, %v53_v7  ;;  %v65_v14 = vld [vmem:[#allocation2] sm:$0xff]  ;;  %vm998_vm5 = vcmask 1043456   ;;  %vm1000_vm6 = vcmask 1044480   ;;  %vm1002_vm7 = vcmask 1045504  }
  0x29   :  { %2370 = vmatpush3.bf16.msra.mxu0 %v2747_v5  ;;  %2376 = vmatpush3.bf16.msra.mxu1 %v2755_v9  ;;  %v2762_v13 = vpack.c.bf16 %v58_v11, %v57_v10  ;;  %v2786_v15 = vld [vmem:[%s3042_s3] ss:$0 sm:$0xff]  ;;  %s2675_s3 = smov 32   ;;  %vm1004_vm8 = vcmask 1046528   ;;  %vm1087_vm9 = vcmask 15360  }
  0x2a   :  { %2371 = vmatprep.subr.bf16.mxu0 %v2671_v0  ;;  %2377 = vmatprep.subr.bf16.mxu1 %v2671_v0 }
  0x2d   :  { %2373 = vmatpush3.bf16.msra.mxu0 %v2758_v12  ;;  %2379 = vmatpush3.bf16.msra.mxu1 %v2762_v13 }
  0x2e   :  { %2380 = vmatprep.subr.bf16.mxu0 %v2671_v0  ;;  %2386 = vmatprep.subr.bf16.mxu1 %v2671_v0 }
  0x30   :  { %2168 = vmatmul.mubr.msk.f32.vlgmr.msra.gmra.mrb[0].mxu0 %vm72_vm1, %v65_v14  ;;  %2179 = vmatmul.mubr.f32.vlgmr.msra.gmra.mrb[0].mxu1 %v2673_v1 }
  0x31   :  { %2382 = vmatpush3.bf16.msra.mxu0 %v2755_v9  ;;  %2189 = vmatprep.mubr.msk.f32.mxu0 %vm2672_vm0, %v2673_v1 }
  0x32   :  { %2383 = vmatprep.subr.bf16.mxu0 %v2671_v0  ;;  %2388 = vmatpush3.bf16.msra.mxu1 %v2755_v9 }
  0x33   :  { %2200 = vmatprep.mubr.msk.f32.mxu1 %vm2672_vm0, %v2673_v1  ;;  %2389 = vmatprep.subr.bf16.mxu1 %v2671_v0 }
  0x35   :  { %2385 = vmatpush3.bf16.msra.mxu0 %v2762_v13 }
  0x36   :  { %2392 = vmatprep.subr.bf16.mxu0 %v2671_v0  ;;  %2391 = vmatpush3.bf16.msra.mxu1 %v2762_v13 }
  0x37   :  { %2398 = vmatprep.subr.bf16.mxu1 %v2671_v0 }
 0x103   :  { %v142_v16 = vpop.f32.mrb[0].mxu0  ;;  %v2791_v19 = vpop.f32.mrb[0].mxu1 }
 0x104   :  { %v2789_v17 = vadd.f32 %v2786_v15, %v142_v16  ;;  %v2169_v18 = vpop.f32.mrb[1].mxu0  ;;  %v2180_v20 = vpop.f32.mrb[1].mxu1 }
 0x106   :  { %v219_v21 = vadd.f32 %v2791_v19, %v2789_v17 }
 0x108   :  { %2491 = vtanh.f32 %v219_v21  ;;  %v2029_v23 = vmul.f32 -1.442695, %v219_v21 }
 0x10a   :  { %2493 = vpow2.f32 %v2029_v23 }
 0x112   :  { %v2492_v22 = vpop.eup %2491 }
 0x113   :  { %229 = vrot.lane.b32.xlu0 %v2492_v22, %s2674_s30 }
 0x114   :  { %v2494_v24 = vpop.eup %2493 }
 0x115   :  { %v223_v25 = vadd.f32 1.0, %v2494_v24 }
 0x117   :  { %2495 = vrcp.f32 %v223_v25 }
 0x121   :  { %v2496_v26 = vpop.eup %2495 }
 0x122   :  { %v227_v29 = vmul.f32 0.0, %v2496_v26 }
 0x185   :  { %v230_v27 = vpop.permute.xlu0 %229 }
 0x186   :  { %v232_v28 = vmul.f32 %v2496_v26, %v230_v27 }
 0x188   :  { %234 = vrot.lane.b32.xlu0 %v232_v28, %s2675_s3 }
 0x1fa   :  { %v235_v30 = vpop.permute.xlu0 %234 }
 0x1fb   :  { %v237_v31 = vadd.f32 %v235_v30, %v227_v29 }
 0x1fd   :  { %2497 = vtanh.f32 %v237_v31  ;;  %v331_v47 = vrot.slane %v237_v31, 7 }
 0x207   :  { %v2498_v32 = vpop.eup %2497 }
 0x208   :  { %240 = vrot.lane.b32.xlu1 %v2498_v32, %s2674_s30 }
 0x27a   :  { %v241_v33 = vpop.permute.xlu1 %240 }
 0x27b   :  { %v2798_v34 = vmul.f32 %v2496_v26, %v241_v33 }
 0x27d   :  { %245 = vrot.lane.b32.xlu1 %v2798_v34, %s2675_s3 }
 0x2ef   :  { %v246_v35 = vpop.permute.xlu1 %245 }
 0x2f0   :  { %2190 = vmatmul.mubr.msk.f32.vlgmr.msra.gmra.mrb[2].mxu0 %vm72_vm1, %v246_v35 }
 0x2f1   :  { %2394 = vmatpush3.bf16.msra.mxu0 %v2755_v9  ;;  %2211 = vmatprep.mubr.msk.f32.mxu0 %vm2672_vm0, %v2673_v1 }
 0x2f2   :  { %2395 = vmatprep.subr.bf16.mxu0 %v2671_v0 }
 0x2f5   :  { %2397 = vmatpush3.bf16.msra.mxu0 %v2762_v13 }
 0x2f6   :  { %2404 = vmatprep.subr.bf16.mxu0 %v2671_v0 }
 0x3c3   :  { %v315_v36 = vpop.f32.mrb[2].mxu0 }
 0x3c4   :  { %v320_v37 = vrot.slane %v315_v36, 7  ;;  %v2191_v38 = vpop.f32.mrb[3].mxu0 }
 0x3c6   :  { %v322_v39 = vadd.f32 %v320_v37, %v2789_v17 }
 0x3c8   :  { %2499 = vtanh.f32 %v322_v39  ;;  %v2031_v41 = vmul.f32 -1.442695, %v322_v39 }
 0x3ca   :  { %2501 = vpow2.f32 %v2031_v41 }
 0x3d2   :  { %v2500_v40 = vpop.eup %2499 }
 0x3d3   :  { %335 = vrot.lane.b32.xlu0 %v2500_v40, %s2674_s30 }
 0x3d4   :  { %v2502_v42 = vpop.eup %2501 }
 0x3d5   :  { %v326_v43 = vadd.f32 1.0, %v2502_v42 }
 0x3d7   :  { %2503 = vrcp.f32 %v326_v43 }
 0x3e1   :  { %v2504_v44 = vpop.eup %2503 }
 0x3e2   :  { %v333_v48 = vmul.f32 %v2504_v44, %v331_v47 }
 0x445   :  { %v336_v45 = vpop.permute.xlu0 %335 }
 0x446   :  { %v338_v46 = vmul.f32 %v2504_v44, %v336_v45 }
 0x448   :  { %340 = vrot.lane.b32.xlu1 %v338_v46, %s2675_s3 }
 0x4ba   :  { %v341_v49 = vpop.permute.xlu1 %340 }
 0x4bb   :  { %v343_v50 = vadd.f32 %v341_v49, %v333_v48 }
 0x4bd   :  { %2505 = vtanh.f32 %v343_v50  ;;  %v438_v6 = vrot.slane %v343_v50, 7 }
 0x4c7   :  { %v2506_v51 = vpop.eup %2505 }
 0x4c8   :  { %346 = vrot.lane.b32.xlu0 %v2506_v51, %s2674_s30 }
 0x53a   :  { %v347_v52 = vpop.permute.xlu0 %346 }
 0x53b   :  { %v349_v53 = vmul.f32 %v2504_v44, %v347_v52 }
 0x53d   :  { %v351_v54 = vrot.slane %v349_v53, 1  ;;  %v993_v18 = vsel %vm992_vm2, %v2798_v34, %v349_v53 }
 0x53f   :  { %352 = vrot.lane.b32.xlu1 %v351_v54, %s2675_s3 }
 0x5b1   :  { %v353_v55 = vpop.permute.xlu1 %352 }
 0x5b2   :  { %2201 = vmatmul.mubr.msk.f32.vlgmr.msra.gmra.mrb[2].mxu1 %vm72_vm1, %v353_v55 }
 0x5b3   :  { %2400 = vmatpush3.bf16.msra.mxu1 %v2755_v9  ;;  %2222 = vmatprep.mubr.msk.f32.mxu1 %vm2672_vm0, %v2673_v1 }
 0x5b4   :  { %2401 = vmatprep.subr.bf16.mxu1 %v2671_v0 }
 0x5b7   :  { %2403 = vmatpush3.bf16.msra.mxu1 %v2762_v13 }
 0x5b8   :  { %2410 = vmatprep.subr.bf16.mxu1 %v2671_v0 }
 0x685   :  { %v422_v56 = vpop.f32.mrb[2].mxu1 }
 0x686   :  { %v427_v57 = vrot.slane %v422_v56, 6  ;;  %v2202_v58 = vpop.f32.mrb[3].mxu1 }
 0x688   :  { %v429_v59 = vadd.f32 %v427_v57, %v2789_v17 }
 0x68a   :  { %2507 = vtanh.f32 %v429_v59  ;;  %v2033_v61 = vmul.f32 -1.442695, %v429_v59 }
 0x68c   :  { %2509 = vpow2.f32 %v2033_v61 }
 0x694   :  { %v2508_v60 = vpop.eup %2507 }
 0x695   :  { %442 = vrot.lane.b32.xlu0 %v2508_v60, %s2674_s30 }
 0x696   :  { %v2510_v62 = vpop.eup %2509 }
 0x697   :  { %v433_v63 = vadd.f32 1.0, %v2510_v62 }
 0x699   :  { %2511 = vrcp.f32 %v433_v63 }
 0x6a3   :  { %v2512_v2 = vpop.eup %2511 }
 0x6a4   :  { %v440_v7 = vmul.f32 %v2512_v2, %v438_v6 }
 0x707   :  { %v443_v3 = vpop.permute.xlu0 %442 }
 0x708   :  { %v445_v4 = vmul.f32 %v2512_v2, %v443_v3 }
 0x70a   :  { %447 = vrot.lane.b32.xlu1 %v445_v4, %s2675_s3 }
 0x77c   :  { %v448_v8 = vpop.permute.xlu1 %447 }
 0x77d   :  { %v450_v10 = vadd.f32 %v448_v8, %v440_v7 }
 0x77f   :  { %2513 = vtanh.f32 %v450_v10  ;;  %v545_v34 = vrot.slane %v450_v10, 7 }
 0x789   :  { %v2514_v11 = vpop.eup %2513 }
 0x78a   :  { %453 = vrot.lane.b32.xlu0 %v2514_v11, %s2674_s30 }
 0x7fc   :  { %v454_v14 = vpop.permute.xlu0 %453 }
 0x7fd   :  { %v456_v16 = vmul.f32 %v2512_v2, %v454_v14 }
 0x7ff   :  { %v458_v20 = vrot.slane %v456_v16, 2  ;;  %v995_v21 = vsel %vm994_vm3, %v993_v18, %v456_v16 }
 0x801   :  { %459 = vrot.lane.b32.xlu1 %v458_v20, %s2675_s3 }
 0x873   :  { %v460_v22 = vpop.permute.xlu1 %459 }
 0x874   :  { %2212 = vmatmul.mubr.msk.f32.vlgmr.msra.gmra.mrb[4].mxu0 %vm72_vm1, %v460_v22 }
 0x875   :  { %2406 = vmatpush3.bf16.msra.mxu0 %v2755_v9  ;;  %2233 = vmatprep.mubr.msk.f32.mxu0 %vm2672_vm0, %v2673_v1 }
 0x876   :  { %2407 = vmatprep.subr.bf16.mxu0 %v2671_v0 }
 0x879   :  { %2409 = vmatpush3.bf16.msra.mxu0 %v2762_v13 }
 0x87a   :  { %2416 = vmatprep.subr.bf16.mxu0 %v2671_v0 }
 0x947   :  { %v529_v23 = vpop.f32.mrb[4].mxu0 }
 0x948   :  { %v534_v24 = vrot.slane %v529_v23, 5  ;;  %v2213_v25 = vpop.f32.mrb[5].mxu0 }
 0x94a   :  { %v536_v26 = vadd.f32 %v534_v24, %v2789_v17 }
 0x94c   :  { %2515 = vtanh.f32 %v536_v26  ;;  %v2035_v28 = vmul.f32 -1.442695, %v536_v26 }
 0x94e   :  { %2517 = vpow2.f32 %v2035_v28 }
 0x956   :  { %v2516_v27 = vpop.eup %2515 }
 0x957   :  { %549 = vrot.lane.b32.xlu0 %v2516_v27, %s2674_s30 }
 0x958   :  { %v2518_v29 = vpop.eup %2517 }
 0x959   :  { %v540_v30 = vadd.f32 1.0, %v2518_v29 }
 0x95b   :  { %2519 = vrcp.f32 %v540_v30 }
 0x965   :  { %v2520_v31 = vpop.eup %2519 }
 0x966   :  { %v547_v35 = vmul.f32 %v2520_v31, %v545_v34 }
 0x9c9   :  { %v550_v32 = vpop.permute.xlu0 %549 }
 0x9ca   :  { %v552_v33 = vmul.f32 %v2520_v31, %v550_v32 }
 0x9cc   :  { %554 = vrot.lane.b32.xlu1 %v552_v33, %s2675_s3 }
 0xa3e   :  { %v555_v36 = vpop.permute.xlu1 %554 }
 0xa3f   :  { %v557_v37 = vadd.f32 %v555_v36, %v547_v35 }
 0xa41   :  { %2521 = vtanh.f32 %v557_v37  ;;  %v652_v55 = vrot.slane %v557_v37, 7 }
 0xa4b   :  { %v2522_v38 = vpop.eup %2521 }
 0xa4c   :  { %560 = vrot.lane.b32.xlu0 %v2522_v38, %s2674_s30 }
 0xabe   :  { %v561_v39 = vpop.permute.xlu0 %560 }
 0xabf   :  { %v563_v40 = vmul.f32 %v2520_v31, %v561_v39 }
 0xac1   :  { %v565_v41 = vrot.slane %v563_v40, 3  ;;  %v997_v42 = vsel %vm996_vm4, %v995_v21, %v563_v40 }
 0xac3   :  { %566 = vrot.lane.b32.xlu1 %v565_v41, %s2675_s3 }
 0xb35   :  { %v567_v43 = vpop.permute.xlu1 %566 }
 0xb36   :  { %2223 = vmatmul.mubr.msk.f32.vlgmr.msra.gmra.mrb[4].mxu1 %vm72_vm1, %v567_v43 }
 0xb37   :  { %2412 = vmatpush3.bf16.msra.mxu1 %v2755_v9  ;;  %2244 = vmatprep.mubr.msk.f32.mxu1 %vm2672_vm0, %v2673_v1 }
 0xb38   :  { %2413 = vmatprep.subr.bf16.mxu1 %v2671_v0 }
 0xb3b   :  { %2415 = vmatpush3.bf16.msra.mxu1 %v2762_v13 }
 0xb3c   :  { %2422 = vmatprep.subr.bf16.mxu1 %v2671_v0 }
 0xc09   :  { %v636_v44 = vpop.f32.mrb[4].mxu1 }
 0xc0a   :  { %v641_v45 = vrot.slane %v636_v44, 4  ;;  %v2224_v46 = vpop.f32.mrb[5].mxu1 }
 0xc0c   :  { %v643_v47 = vadd.f32 %v641_v45, %v2789_v17 }
 0xc0e   :  { %2523 = vtanh.f32 %v643_v47  ;;  %v2037_v49 = vmul.f32 -1.442695, %v643_v47 }
 0xc10   :  { %2525 = vpow2.f32 %v2037_v49 }
 0xc18   :  { %v2524_v48 = vpop.eup %2523 }
 0xc19   :  { %656 = vrot.lane.b32.xlu0 %v2524_v48, %s2674_s30 }
 0xc1a   :  { %v2526_v50 = vpop.eup %2525 }
 0xc1b   :  { %v647_v51 = vadd.f32 1.0, %v2526_v50 }
 0xc1d   :  { %2527 = vrcp.f32 %v647_v51 }
 0xc27   :  { %v2528_v52 = vpop.eup %2527 }
 0xc28   :  { %v654_v56 = vmul.f32 %v2528_v52, %v652_v55 }
 0xc8b   :  { %v657_v53 = vpop.permute.xlu0 %656 }
 0xc8c   :  { %v659_v54 = vmul.f32 %v2528_v52, %v657_v53 }
 0xc8e   :  { %661 = vrot.lane.b32.xlu1 %v659_v54, %s2675_s3 }
 0xd00   :  { %v662_v57 = vpop.permute.xlu1 %661 }
 0xd01   :  { %v664_v58 = vadd.f32 %v662_v57, %v654_v56 }
 0xd03   :  { %2529 = vtanh.f32 %v664_v58  ;;  %v759_v21 = vrot.slane %v664_v58, 7 }
 0xd0d   :  { %v2530_v59 = vpop.eup %2529 }
 0xd0e   :  { %667 = vrot.lane.b32.xlu0 %v2530_v59, %s2674_s30 }
 0xd80   :  { %v668_v60 = vpop.permute.xlu0 %667 }
 0xd81   :  { %v670_v61 = vmul.f32 %v2528_v52, %v668_v60  ;;  %v1090_v52 = vld [vmem:[#allocation2 + $0x8] sm:$0xff] }
 0xd83   :  { %v672_v62 = vrot.slane %v670_v61, 4  ;;  %v999_v63 = vsel %vm998_vm5, %v997_v42, %v670_v61 }
 0xd85   :  { %673 = vrot.lane.b32.xlu1 %v672_v62, %s2675_s3 }
 0xdf7   :  { %v674_v2 = vpop.permute.xlu1 %673 }
 0xdf8   :  { %2234 = vmatmul.mubr.msk.f32.vlgmr.msra.gmra.mrb[6].mxu0 %vm72_vm1, %v674_v2 }
 0xdf9   :  { %2418 = vmatpush3.bf16.msra.mxu0 %v2755_v9  ;;  %2255 = vmatprep.mubr.msk.f32.mxu0 %vm2672_vm0, %v2673_v1 }
 0xdfa   :  { %2419 = vmatprep.subr.bf16.mxu0 %v2671_v0 }
 0xdfd   :  { %2421 = vmatpush3.bf16.msra.mxu0 %v2762_v13 }
 0xdfe   :  { %2428 = vmatprep.subr.bf16.mxu0 %v2671_v0 }
 0xecb   :  { %v743_v3 = vpop.f32.mrb[6].mxu0 }
 0xecc   :  { %v748_v4 = vrot.slane %v743_v3, 3  ;;  %v2235_v6 = vpop.f32.mrb[7].mxu0 }
 0xece   :  { %v750_v7 = vadd.f32 %v748_v4, %v2789_v17 }
 0xed0   :  { %2531 = vtanh.f32 %v750_v7  ;;  %v2039_v10 = vmul.f32 -1.442695, %v750_v7 }
 0xed2   :  { %2533 = vpow2.f32 %v2039_v10 }
 0xeda   :  { %v2532_v8 = vpop.eup %2531 }
 0xedb   :  { %763 = vrot.lane.b32.xlu0 %v2532_v8, %s2674_s30 }
 0xedc   :  { %v2534_v11 = vpop.eup %2533 }
 0xedd   :  { %v754_v14 = vadd.f32 1.0, %v2534_v11 }
 0xedf   :  { %2535 = vrcp.f32 %v754_v14 }
 0xee9   :  { %v2536_v16 = vpop.eup %2535 }
 0xeea   :  { %v761_v22 = vmul.f32 %v2536_v16, %v759_v21 }
 0xf4d   :  { %v764_v18 = vpop.permute.xlu0 %763 }
 0xf4e   :  { %v766_v20 = vmul.f32 %v2536_v16, %v764_v18 }
 0xf50   :  { %768 = vrot.lane.b32.xlu1 %v766_v20, %s2675_s3 }
 0xfc2   :  { %v769_v23 = vpop.permute.xlu1 %768 }
 0xfc3   :  { %v771_v24 = vadd.f32 %v769_v23, %v761_v22  ;;  %v60_v22 = vld [vmem:[%s3043_s4] sm:$0xff]  ;;  %v61_v23 = vld [vmem:[%s3043_s4 + $0x8] sm:$0xff] }
 0xfc5   :  { %2537 = vtanh.f32 %v771_v24  ;;  %v866_v42 = vrot.slane %v771_v24, 7  ;;  %v62_v24 = vld [vmem:[%s3043_s4 + $0x10] sm:$0xff] }
 0xfcf   :  { %v2538_v25 = vpop.eup %2537 }
 0xfd0   :  { %774 = vrot.lane.b32.xlu0 %v2538_v25, %s2674_s30  ;;  %v2912_v25 = vpack.c.bf16 %v61_v23, %v60_v22 }
0x1042   :  { %v775_v26 = vpop.permute.xlu0 %774 }
0x1043   :  { %v777_v27 = vmul.f32 %v2536_v16, %v775_v26  ;;  %v63_v26 = vld [vmem:[%s3043_s4 + $0x18] sm:$0xff] }
0x1045   :  { %v779_v28 = vrot.slane %v777_v27, 5  ;;  %v1001_v29 = vsel %vm1000_vm6, %v999_v63, %v777_v27 }
0x1047   :  { %780 = vrot.lane.b32.xlu1 %v779_v28, %s2675_s3  ;;  %v2919_v28 = vpack.c.bf16 %v63_v26, %v62_v24 }
0x10b9   :  { %v781_v30 = vpop.permute.xlu1 %780 }
0x10ba   :  { %2245 = vmatmul.mubr.msk.f32.vlgmr.msra.gmra.mrb[6].mxu1 %vm72_vm1, %v781_v30 }
0x10bb   :  { %2266 = vmatprep.mubr.msk.f32.mxu1 %vm2672_vm0, %v2673_v1  ;;  %2424 = vmatpush3.bf16.msra.mxu1 %v2912_v25 }
0x10bc   :  { %2425 = vmatprep.subr.bf16.mxu1 %v2671_v0 }
0x10bf   :  { %2427 = vmatpush3.bf16.msra.mxu1 %v2919_v28 }
0x10c0   :  { %2434 = vmatprep.subr.bf16.mxu1 %v2671_v0 }
0x118d   :  { %v850_v31 = vpop.f32.mrb[6].mxu1 }
0x118e   :  { %v855_v32 = vrot.slane %v850_v31, 2  ;;  %v2246_v33 = vpop.f32.mrb[7].mxu1 }
0x1190   :  { %v857_v34 = vadd.f32 %v855_v32, %v2789_v17 }
0x1192   :  { %2539 = vtanh.f32 %v857_v34  ;;  %v2041_v36 = vmul.f32 -1.442695, %v857_v34 }
0x1194   :  { %2541 = vpow2.f32 %v2041_v36 }
0x119c   :  { %v2540_v35 = vpop.eup %2539 }
0x119d   :  { %870 = vrot.lane.b32.xlu0 %v2540_v35, %s2674_s30 }
0x119e   :  { %v2542_v37 = vpop.eup %2541 }
0x119f   :  { %v861_v38 = vadd.f32 1.0, %v2542_v37  ;;  %v2949_v37 = vld [vmem:[%s3044_s5] ss:$0 sm:$0xff] }
0x11a1   :  { %2543 = vrcp.f32 %v861_v38 }
0x11ab   :  { %v2544_v39 = vpop.eup %2543 }
0x11ac   :  { %v868_v43 = vmul.f32 %v2544_v39, %v866_v42 }
0x120f   :  { %v871_v40 = vpop.permute.xlu0 %870 }
0x1210   :  { %v873_v41 = vmul.f32 %v2544_v39, %v871_v40 }
0x1212   :  { %875 = vrot.lane.b32.xlu1 %v873_v41, %s2675_s3 }
0x1284   :  { %v876_v44 = vpop.permute.xlu1 %875 }
0x1285   :  { %v878_v45 = vadd.f32 %v876_v44, %v868_v43 }
0x1287   :  { %2545 = vtanh.f32 %v878_v45  ;;  %v973_v10 = vrot.slane %v878_v45, 7 }
0x1291   :  { %v2546_v46 = vpop.eup %2545 }
0x1292   :  { %881 = vrot.lane.b32.xlu0 %v2546_v46, %s2674_s30 }
0x1304   :  { %v882_v47 = vpop.permute.xlu0 %881 }
0x1305   :  { %v884_v48 = vmul.f32 %v2544_v39, %v882_v47 }
0x1307   :  { %v886_v49 = vrot.slane %v884_v48, 6  ;;  %v2876_v50 = vsel %vm1002_vm7, %v1001_v29, %v884_v48 }
0x1309   :  { %887 = vrot.lane.b32.xlu1 %v886_v49, %s2675_s3 }
0x137b   :  { %v888_v51 = vpop.permute.xlu1 %887 }
0x137c   :  { %2256 = vmatmul.mubr.msk.f32.vlgmr.msra.gmra.mrb[8].mxu0 %vm72_vm1, %v888_v51 }
0x137d   :  { %2430 = vmatpush3.bf16.msra.mxu0 %v2747_v5  ;;  %2277 = vmatprep.mubr.msk.f32.mxu0 %vm2672_vm0, %v2673_v1 }
0x137e   :  { %2431 = vmatprep.subr.bf16.mxu0 %v2671_v0 }
0x1381   :  { %2433 = vmatpush3.bf16.msra.mxu0 %v2758_v12 }
0x1382   :  { %2440 = vmatprep.subr.bf16.mxu0 %v2671_v0 }
0x1384   :  { %2278 = vmatmul.mubr.msk.f32.vlgmr.msra.gmra.mrb[10].mxu0 %vm72_vm1, %v1090_v52 }
0x1385   :  { %2442 = vmatpush3.bf16.msra.mxu0 %v2755_v9  ;;  %2299 = vmatprep.mubr.msk.f32.mxu0 %vm2672_vm0, %v2673_v1 }
0x1386   :  { %2443 = vmatprep.subr.bf16.mxu0 %v2671_v0 }
0x1389   :  { %2445 = vmatpush3.bf16.msra.mxu0 %v2762_v13 }
0x138a   :  { %2452 = vmatprep.subr.bf16.mxu0 %v2671_v0 }
0x144f   :  { %v957_v5 = vpop.f32.mrb[8].mxu0 }
0x1450   :  { %v962_v53 = vrot.slane %v957_v5, 1  ;;  %v2257_v54 = vpop.f32.mrb[9].mxu0 }
0x1452   :  { %v964_v12 = vadd.f32 %v962_v53, %v2789_v17 }
0x1454   :  { %2547 = vtanh.f32 %v964_v12  ;;  %v2043_v61 = vmul.f32 -1.442695, %v964_v12 }
0x1457   :  { %v1160_v55 = vpop.f32.mrb[10].mxu0 }
0x1458   :  { %v2895_v56 = vadd.f32 %v2786_v15, %v1160_v55  ;;  %v2279_v57 = vpop.f32.mrb[11].mxu0 }
0x145a   :  { %v1164_v58 = vadd.f32 %v2895_v56, %v2791_v19 }
0x145c   :  { %2549 = vtanh.f32 %v1164_v58  ;;  %v2047_v62 = vmul.f32 -1.442695, %v1164_v58 }
0x145d   :  { %2551 = vpow2.f32 %v2043_v61 }
0x145e   :  { %v2548_v59 = vpop.eup %2547  ;;  %2553 = vpow2.f32 %v2047_v62 }
0x145f   :  { %977 = vrot.lane.b32.xlu0 %v2548_v59, %s2674_s30 }
0x1466   :  { %v2550_v60 = vpop.eup %2549 }
0x1467   :  { %1174 = vrot.lane.b32.xlu1 %v2550_v60, %s2674_s30  ;;  %v2552_v17 = vpop.eup %2551 }
0x1468   :  { %v968_v63 = vadd.f32 1.0, %v2552_v17  ;;  %v2554_v15 = vpop.eup %2553 }
0x1469   :  { %v1168_v2 = vadd.f32 1.0, %v2554_v15 }
0x146a   :  { %2555 = vrcp.f32 %v968_v63 }
0x146b   :  { %2557 = vrcp.f32 %v1168_v2 }
0x1474   :  { %v2556_v3 = vpop.eup %2555 }
0x1475   :  { %v2558_v6 = vpop.eup %2557  ;;  %v975_v11 = vmul.f32 %v2556_v3, %v973_v10 }
0x1476   :  { %v1172_v18 = vmul.f32 0.0, %v2558_v6 }
0x14d1   :  { %v978_v4 = vpop.permute.xlu0 %977 }
0x14d2   :  { %v980_v19 = vmul.f32 %v2556_v3, %v978_v4 }
0x14d4   :  { %982 = vrot.lane.b32.xlu0 %v980_v19, %s2675_s3 }
0x14d9   :  { %v1175_v7 = vpop.permute.xlu1 %1174 }
0x14da   :  { %v1177_v8 = vmul.f32 %v2558_v6, %v1175_v7 }
0x14dc   :  { %1179 = vrot.lane.b32.xlu1 %v1177_v8, %s2675_s3 }
0x1546   :  { %v983_v14 = vpop.permute.xlu0 %982 }
0x1547   :  { %v985_v16 = vadd.f32 %v983_v14, %v975_v11 }
0x1549   :  { %2559 = vtanh.f32 %v985_v16 }
0x154e   :  { %v1180_v20 = vpop.permute.xlu1 %1179 }
0x154f   :  { %v1182_v21 = vadd.f32 %v1180_v20, %v1172_v18 }
0x1551   :  { %2561 = vtanh.f32 %v1182_v21  ;;  %v1276_v52 = vrot.slane %v1182_v21, 7 }
0x1553   :  { %v2560_v27 = vpop.eup %2559 }
0x1554   :  { %988 = vrot.lane.b32.xlu0 %v2560_v27, %s2674_s30 }
0x155b   :  { %v2562_v29 = vpop.eup %2561 }
0x155c   :  { %1185 = vrot.lane.b32.xlu1 %v2562_v29, %s2674_s30 }
0x15c6   :  { %v989_v30 = vpop.permute.xlu0 %988 }
0x15c7   :  { %v991_v31 = vmul.f32 %v2556_v3, %v989_v30 }
0x15c9   :  { %v1005_v32 = vsel %vm1004_vm8, %v2876_v50, %v991_v31 }
0x15ca   :  { %1013 = vrot.lane.b32.xlu0 %v1005_v32, %s2675_s3 }
0x15ce   :  { %v1186_v33 = vpop.permute.xlu1 %1185 }
0x15cf   :  { %v2928_v34 = vmul.f32 %v2558_v6, %v1186_v33 }
0x15d1   :  { %1190 = vrot.lane.b32.xlu1 %v2928_v34, %s2675_s3 }
0x163c   :  { %v1014_v35 = vpop.permute.xlu0 %1013 }
0x163d   :  { %2267 = vmatmul.mubr.msk.f32.vlgmr.msra.gmra.mrb[8].mxu1 %vm72_vm1, %v1014_v35 }
0x163e   :  { %2436 = vmatpush3.bf16.msra.mxu1 %v2755_v9  ;;  %2288 = vmatprep.mubr.msk.f32.mxu1 %vm2672_vm0, %v2673_v1 }
0x163f   :  { %2437 = vmatprep.subr.bf16.mxu1 %v2671_v0 }
0x1642   :  { %2439 = vmatpush3.bf16.msra.mxu1 %v2762_v13 }
0x1643   :  { %v1191_v36 = vpop.permute.xlu1 %1190  ;;  %2446 = vmatprep.subr.bf16.mxu1 %v2671_v0 }
0x1645   :  { %2289 = vmatmul.mubr.msk.f32.vlgmr.msra.gmra.mrb[10].mxu1 %vm72_vm1, %v1191_v36 }
0x1646   :  { %2448 = vmatpush3.bf16.msra.mxu1 %v2755_v9  ;;  %2310 = vmatprep.mubr.msk.f32.mxu1 %vm2672_vm0, %v2673_v1 }
0x1647   :  { %2449 = vmatprep.subr.bf16.mxu1 %v2671_v0 }
0x164a   :  { %2451 = vmatpush3.bf16.msra.mxu1 %v2762_v13 }
0x164b   :  { %2458 = vmatprep.subr.bf16.mxu1 %v2671_v0 }
0x1710   :  { %v1083_v38 = vpop.f32.mrb[8].mxu1 }
0x1711   :  { %v1084_v39 = vadd.f32 %v2949_v37, %v1083_v38  ;;  %v2268_v40 = vpop.f32.mrb[9].mxu1 }
0x1713   :  { %1088 = vst.msk [vmem:[%s3045_s6] sm:$0xff] %vm1087_vm9, %v1084_v39 }
0x1718   :  { %v1260_v41 = vpop.f32.mrb[10].mxu1 }
0x1719   :  { %v1265_v42 = vrot.slane %v1260_v41, 7  ;;  %v2290_v43 = vpop.f32.mrb[11].mxu1 }
0x171b   :  { %v1267_v44 = vadd.f32 %v1265_v42, %v2895_v56 }
0x171d   :  { %2563 = vtanh.f32 %v1267_v44  ;;  %v2049_v46 = vmul.f32 -1.442695, %v1267_v44 }
0x171f   :  { %2565 = vpow2.f32 %v2049_v46 }
0x1727   :  { %v2564_v45 = vpop.eup %2563 }
0x1728   :  { %1280 = vrot.lane.b32.xlu0 %v2564_v45, %s2674_s30 }
0x1729   :  { %v2566_v47 = vpop.eup %2565 }
0x172a   :  { %v1271_v48 = vadd.f32 1.0, %v2566_v47 }
0x172c   :  { %2567 = vrcp.f32 %v1271_v48 }
0x1736   :  { %v2568_v49 = vpop.eup %2567 }
0x1737   :  { %v1278_v5 = vmul.f32 %v2568_v49, %v1276_v52 }
0x179a   :  { %v1281_v50 = vpop.permute.xlu0 %1280 }
0x179b   :  { %v1283_v51 = vmul.f32 %v2568_v49, %v1281_v50 }
0x179d   :  { %1285 = vrot.lane.b32.xlu1 %v1283_v51, %s2675_s3 }
0x180f   :  { %v1286_v53 = vpop.permute.xlu1 %1285 }
0x1810   :  { %v1288_v54 = vadd.f32 %v1286_v53, %v1278_v5 }
0x1812   :  { %2569 = vtanh.f32 %v1288_v54  ;;  %v1383_v7 = vrot.slane %v1288_v54, 7 }
0x181c   :  { %v2570_v12 = vpop.eup %2569 }
0x181d   :  { %1291 = vrot.lane.b32.xlu0 %v2570_v12, %s2674_s30 }
0x188f   :  { %v1292_v55 = vpop.permute.xlu0 %1291 }
0x1890   :  { %v1294_v57 = vmul.f32 %v2568_v49, %v1292_v55 }
0x1892   :  { %v1296_v58 = vrot.slane %v1294_v57, 1  ;;  %v1937_v20 = vsel %vm992_vm2, %v2928_v34, %v1294_v57 }
0x1894   :  { %1297 = vrot.lane.b32.xlu1 %v1296_v58, %s2675_s3 }
0x1906   :  { %v1298_v59 = vpop.permute.xlu1 %1297 }
0x1907   :  { %2300 = vmatmul.mubr.msk.f32.vlgmr.msra.gmra.mrb[12].mxu0 %vm72_vm1, %v1298_v59 }
0x1908   :  { %2454 = vmatpush3.bf16.msra.mxu0 %v2755_v9  ;;  %2321 = vmatprep.mubr.msk.f32.mxu0 %vm2672_vm0, %v2673_v1 }
0x1909   :  { %2455 = vmatprep.subr.bf16.mxu0 %v2671_v0 }
0x190c   :  { %2457 = vmatpush3.bf16.msra.mxu0 %v2762_v13 }
0x190d   :  { %2464 = vmatprep.subr.bf16.mxu0 %v2671_v0 }
0x19da   :  { %v1367_v60 = vpop.f32.mrb[12].mxu0 }
0x19db   :  { %v1372_v61 = vrot.slane %v1367_v60, 6  ;;  %v2301_v62 = vpop.f32.mrb[13].mxu0 }
0x19dd   :  { %v1374_v17 = vadd.f32 %v1372_v61, %v2895_v56 }
0x19df   :  { %2571 = vtanh.f32 %v1374_v17  ;;  %v2051_v15 = vmul.f32 -1.442695, %v1374_v17 }
0x19e1   :  { %2573 = vpow2.f32 %v2051_v15 }
0x19e9   :  { %v2572_v63 = vpop.eup %2571 }
0x19ea   :  { %1387 = vrot.lane.b32.xlu0 %v2572_v63, %s2674_s30 }
0x19eb   :  { %v2574_v2 = vpop.eup %2573 }
0x19ec   :  { %v1378_v3 = vadd.f32 1.0, %v2574_v2 }
0x19ee   :  { %2575 = vrcp.f32 %v1378_v3 }
0x19f8   :  { %v2576_v4 = vpop.eup %2575 }
0x19f9   :  { %v1385_v8 = vmul.f32 %v2576_v4, %v1383_v7 }
0x1a5c   :  { %v1388_v19 = vpop.permute.xlu0 %1387 }
0x1a5d   :  { %v1390_v6 = vmul.f32 %v2576_v4, %v1388_v19 }
0x1a5f   :  { %1392 = vrot.lane.b32.xlu1 %v1390_v6, %s2675_s3 }
0x1ad1   :  { %v1393_v10 = vpop.permute.xlu1 %1392 }
0x1ad2   :  { %v1395_v11 = vadd.f32 %v1393_v10, %v1385_v8 }
0x1ad4   :  { %2577 = vtanh.f32 %v1395_v11  ;;  %v1490_v38 = vrot.slane %v1395_v11, 7 }
0x1ade   :  { %v2578_v14 = vpop.eup %2577 }
0x1adf   :  { %1398 = vrot.lane.b32.xlu0 %v2578_v14, %s2674_s30 }
0x1b51   :  { %v1399_v16 = vpop.permute.xlu0 %1398 }
0x1b52   :  { %v1401_v18 = vmul.f32 %v2576_v4, %v1399_v16 }
0x1b54   :  { %v1403_v21 = vrot.slane %v1401_v18, 2  ;;  %v1938_v22 = vsel %vm994_vm3, %v1937_v20, %v1401_v18 }
0x1b56   :  { %1404 = vrot.lane.b32.xlu1 %v1403_v21, %s2675_s3 }
0x1bc8   :  { %v1405_v23 = vpop.permute.xlu1 %1404 }
0x1bc9   :  { %2311 = vmatmul.mubr.msk.f32.vlgmr.msra.gmra.mrb[12].mxu1 %vm72_vm1, %v1405_v23 }
0x1bca   :  { %2460 = vmatpush3.bf16.msra.mxu1 %v2755_v9  ;;  %2332 = vmatprep.mubr.msk.f32.mxu1 %vm2672_vm0, %v2673_v1 }
0x1bcb   :  { %2461 = vmatprep.subr.bf16.mxu1 %v2671_v0 }
0x1bce   :  { %2463 = vmatpush3.bf16.msra.mxu1 %v2762_v13 }
0x1bcf   :  { %2470 = vmatprep.subr.bf16.mxu1 %v2671_v0 }
0x1c9c   :  { %v1474_v24 = vpop.f32.mrb[12].mxu1 }
0x1c9d   :  { %v1479_v26 = vrot.slane %v1474_v24, 5  ;;  %v2312_v27 = vpop.f32.mrb[13].mxu1 }
0x1c9f   :  { %v1481_v29 = vadd.f32 %v1479_v26, %v2895_v56 }
0x1ca1   :  { %2579 = vtanh.f32 %v1481_v29  ;;  %v2053_v31 = vmul.f32 -1.442695, %v1481_v29 }
0x1ca3   :  { %2581 = vpow2.f32 %v2053_v31 }
0x1cab   :  { %v2580_v30 = vpop.eup %2579 }
0x1cac   :  { %1494 = vrot.lane.b32.xlu0 %v2580_v30, %s2674_s30 }
0x1cad   :  { %v2582_v32 = vpop.eup %2581 }
0x1cae   :  { %v1485_v33 = vadd.f32 1.0, %v2582_v32 }
0x1cb0   :  { %2583 = vrcp.f32 %v1485_v33 }
0x1cba   :  { %v2584_v34 = vpop.eup %2583 }
0x1cbb   :  { %v1492_v39 = vmul.f32 %v2584_v34, %v1490_v38 }
0x1d1e   :  { %v1495_v35 = vpop.permute.xlu0 %1494 }
0x1d1f   :  { %v1497_v36 = vmul.f32 %v2584_v34, %v1495_v35 }
0x1d21   :  { %1499 = vrot.lane.b32.xlu1 %v1497_v36, %s2675_s3 }
0x1d93   :  { %v1500_v40 = vpop.permute.xlu1 %1499 }
0x1d94   :  { %v1502_v41 = vadd.f32 %v1500_v40, %v1492_v39 }
0x1d96   :  { %2585 = vtanh.f32 %v1502_v41  ;;  %v1597_v58 = vrot.slane %v1502_v41, 7 }
0x1da0   :  { %v2586_v42 = vpop.eup %2585 }
0x1da1   :  { %1505 = vrot.lane.b32.xlu0 %v2586_v42, %s2674_s30 }
0x1e13   :  { %v1506_v43 = vpop.permute.xlu0 %1505 }
0x1e14   :  { %v1508_v44 = vmul.f32 %v2584_v34, %v1506_v43 }
0x1e16   :  { %v1510_v45 = vrot.slane %v1508_v44, 3  ;;  %v1939_v46 = vsel %vm996_vm4, %v1938_v22, %v1508_v44 }
0x1e18   :  { %1511 = vrot.lane.b32.xlu1 %v1510_v45, %s2675_s3 }
0x1e8a   :  { %v1512_v47 = vpop.permute.xlu1 %1511 }
0x1e8b   :  { %2322 = vmatmul.mubr.msk.f32.vlgmr.msra.gmra.mrb[14].mxu0 %vm72_vm1, %v1512_v47 }
0x1e8c   :  { %2466 = vmatpush3.bf16.msra.mxu0 %v2755_v9  ;;  %2343 = vmatprep.mubr.msk.f32.mxu0 %vm2672_vm0, %v2673_v1 }
0x1e8d   :  { %2467 = vmatprep.subr.bf16.mxu0 %v2671_v0 }
0x1e90   :  { %2469 = vmatpush3.bf16.msra.mxu0 %v2762_v13 }
0x1e91   :  { %2476 = vmatprep.subr.bf16.mxu0 %v2671_v0 }
0x1f5e   :  { %v1581_v48 = vpop.f32.mrb[14].mxu0 }
0x1f5f   :  { %v1586_v49 = vrot.slane %v1581_v48, 4  ;;  %v2323_v50 = vpop.f32.mrb[15].mxu0 }
0x1f61   :  { %v1588_v51 = vadd.f32 %v1586_v49, %v2895_v56 }
0x1f63   :  { %2587 = vtanh.f32 %v1588_v51  ;;  %v2055_v5 = vmul.f32 -1.442695, %v1588_v51 }
0x1f65   :  { %2589 = vpow2.f32 %v2055_v5 }
0x1f6d   :  { %v2588_v52 = vpop.eup %2587 }
0x1f6e   :  { %1601 = vrot.lane.b32.xlu0 %v2588_v52, %s2674_s30 }
0x1f6f   :  { %v2590_v53 = vpop.eup %2589 }
0x1f70   :  { %v1592_v54 = vadd.f32 1.0, %v2590_v53 }
0x1f72   :  { %2591 = vrcp.f32 %v1592_v54 }
0x1f7c   :  { %v2592_v12 = vpop.eup %2591 }
0x1f7d   :  { %v1599_v59 = vmul.f32 %v2592_v12, %v1597_v58 }
0x1fe0   :  { %v1602_v55 = vpop.permute.xlu0 %1601 }
0x1fe1   :  { %v1604_v57 = vmul.f32 %v2592_v12, %v1602_v55 }
0x1fe3   :  { %1606 = vrot.lane.b32.xlu1 %v1604_v57, %s2675_s3 }
0x2055   :  { %v1607_v60 = vpop.permute.xlu1 %1606 }
0x2056   :  { %v1609_v61 = vadd.f32 %v1607_v60, %v1599_v59 }
0x2058   :  { %2593 = vtanh.f32 %v1609_v61 }
0x2062   :  { %v2594_v62 = vpop.eup %2593 }
0x2063   :  { %1612 = vrot.lane.b32.xlu0 %v2594_v62, %s2674_s30 }
0x20d5   :  { %v1613_v17 = vpop.permute.xlu0 %1612 }
0x20d6   :  { %v1615_v63 = vmul.f32 %v2592_v12, %v1613_v17 }
0x20d8   :  { %v1617_v15 = vrot.slane %v1615_v63, 4  ;;  %v1940_v2 = vsel %vm998_vm5, %v1939_v46, %v1615_v63 }
0x20da   :  { %1618 = vrot.lane.b32.xlu1 %v1617_v15, %s2675_s3 }
0x214c   :  { %v1619_v3 = vpop.permute.xlu1 %1618 }
0x214d   :  { %2333 = vmatmul.mubr.msk.f32.vlgmr.msra.gmra.mrb[14].mxu1 %vm72_vm1, %v1619_v3 }
0x214e   :  { %2472 = vmatpush3.bf16.msra.mxu1 %v2755_v9  ;;  %2354 = vmatprep.mubr.msk.f32.mxu1 %vm2672_vm0, %v2673_v1 }
0x214f   :  { %2473 = vmatprep.subr.bf16.mxu1 %v2671_v0 }
0x2152   :  { %2475 = vmatpush3.bf16.msra.mxu1 %v2762_v13  ;;  %v1704_v13 = vrot.slane %v1609_v61, 7 }
0x2220   :  { %v1688_v4 = vpop.f32.mrb[14].mxu1 }
0x2221   :  { %v1693_v19 = vrot.slane %v1688_v4, 3  ;;  %v2334_v6 = vpop.f32.mrb[15].mxu1 }
0x2223   :  { %v1695_v7 = vadd.f32 %v1693_v19, %v2895_v56 }
0x2225   :  { %2595 = vtanh.f32 %v1695_v7  ;;  %v2057_v10 = vmul.f32 -1.442695, %v1695_v7 }
0x2227   :  { %2597 = vpow2.f32 %v2057_v10 }
0x222f   :  { %v2596_v8 = vpop.eup %2595 }
0x2230   :  { %1708 = vrot.lane.b32.xlu0 %v2596_v8, %s2674_s30 }
0x2231   :  { %v2598_v11 = vpop.eup %2597 }
0x2232   :  { %v1699_v9 = vadd.f32 1.0, %v2598_v11 }
0x2234   :  { %2599 = vrcp.f32 %v1699_v9 }
0x223e   :  { %v2600_v14 = vpop.eup %2599 }
0x223f   :  { %v1706_v20 = vmul.f32 %v2600_v14, %v1704_v13 }
0x22a2   :  { %v1709_v16 = vpop.permute.xlu0 %1708 }
0x22a3   :  { %v1711_v18 = vmul.f32 %v2600_v14, %v1709_v16 }
0x22a5   :  { %1713 = vrot.lane.b32.xlu1 %v1711_v18, %s2675_s3 }
0x2317   :  { %v1714_v21 = vpop.permute.xlu1 %1713 }
0x2318   :  { %v1716_v22 = vadd.f32 %v1714_v21, %v1706_v20 }
0x231a   :  { %2601 = vtanh.f32 %v1716_v22 }
0x2324   :  { %v2602_v23 = vpop.eup %2601 }
0x2325   :  { %1719 = vrot.lane.b32.xlu0 %v2602_v23, %s2674_s30 }
0x2397   :  { %v1720_v24 = vpop.permute.xlu0 %1719 }
0x2398   :  { %v1722_v26 = vmul.f32 %v2600_v14, %v1720_v24 }
0x239a   :  { %v1724_v27 = vrot.slane %v1722_v26, 5  ;;  %v1941_v29 = vsel %vm1000_vm6, %v1940_v2, %v1722_v26 }
0x239c   :  { %1725 = vrot.lane.b32.xlu1 %v1724_v27, %s2675_s3 }
0x240e   :  { %v1726_v30 = vpop.permute.xlu1 %1725 }
0x240f   :  { %2344 = vmatmul.mubr.msk.f32.vlgmr.msra.gmra.mrb[16].mxu0 %vm72_vm1, %v1726_v30 }
0x2410   :  { %2478 = vmatpush3.bf16.msra.mxu0 %v2912_v25  ;;  %2365 = vmatprep.mubr.msk.f32.mxu0 %vm2672_vm0, %v2673_v1 }
0x2411   :  { %2479 = vmatprep.subr.bf16.mxu0 %v2671_v0  ;;  %v1811_v0 = vrot.slane %v1716_v22, 7 }
0x2414   :  { %2481 = vmatpush3.bf16.msra.mxu0 %v2919_v28 }
0x24e2   :  { %v1795_v31 = vpop.f32.mrb[16].mxu0 }
0x24e3   :  { %v1800_v32 = vrot.slane %v1795_v31, 2  ;;  %v2345_v33 = vpop.f32.mrb[17].mxu0 }
0x24e5   :  { %v1802_v34 = vadd.f32 %v1800_v32, %v2895_v56 }
0x24e7   :  { %2603 = vtanh.f32 %v1802_v34  ;;  %v2059_v36 = vmul.f32 -1.442695, %v1802_v34 }
0x24e9   :  { %2605 = vpow2.f32 %v2059_v36 }
0x24f1   :  { %v2604_v35 = vpop.eup %2603 }
0x24f2   :  { %1815 = vrot.lane.b32.xlu0 %v2604_v35, %s2674_s30 }
0x24f3   :  { %v2606_v38 = vpop.eup %2605 }
0x24f4   :  { %v1806_v25 = vadd.f32 1.0, %v2606_v38 }
0x24f6   :  { %2607 = vrcp.f32 %v1806_v25 }
0x2500   :  { %v2608_v39 = vpop.eup %2607 }
0x2501   :  { %v1813_v28 = vmul.f32 %v2608_v39, %v1811_v0 }
0x2564   :  { %v1816_v1 = vpop.permute.xlu0 %1815 }
0x2565   :  { %v1818_v40 = vmul.f32 %v2608_v39, %v1816_v1 }
0x2567   :  { %1820 = vrot.lane.b32.xlu1 %v1818_v40, %s2675_s3 }
0x25d9   :  { %v1821_v41 = vpop.permute.xlu1 %1820 }
0x25da   :  { %v1823_v42 = vadd.f32 %v1821_v41, %v1813_v28 }
0x25dc   :  { %2609 = vtanh.f32 %v1823_v42  ;;  %v1918_v59 = vrot.slane %v1823_v42, 7 }
0x25e6   :  { %v2610_v43 = vpop.eup %2609 }
0x25e7   :  { %1826 = vrot.lane.b32.xlu0 %v2610_v43, %s2674_s30 }
0x2659   :  { %v1827_v44 = vpop.permute.xlu0 %1826 }
0x265a   :  { %v1829_v45 = vmul.f32 %v2608_v39, %v1827_v44 }
0x265c   :  { %v1831_v46 = vrot.slane %v1829_v45, 6  ;;  %v1942_v47 = vsel %vm1002_vm7, %v1941_v29, %v1829_v45 }
0x265e   :  { %1832 = vrot.lane.b32.xlu1 %v1831_v46, %s2675_s3 }
0x26d0   :  { %v1833_v48 = vpop.permute.xlu1 %1832 }
0x26d1   :  { %2355 = vmatmul.mubr.msk.f32.vlgmr.msra.gmra.mrb[16].mxu1 %vm72_vm1, %v1833_v48 }
0x27a4   :  { %v1902_v49 = vpop.f32.mrb[16].mxu1 }
0x27a5   :  { %v1907_v50 = vrot.slane %v1902_v49, 1  ;;  %v2356_v51 = vpop.f32.mrb[17].mxu1 }
0x27a7   :  { %v1909_v52 = vadd.f32 %v1907_v50, %v2895_v56 }
0x27a9   :  { %2611 = vtanh.f32 %v1909_v52  ;;  %v2061_v53 = vmul.f32 -1.442695, %v1909_v52 }
0x27ab   :  { %2613 = vpow2.f32 %v2061_v53 }
0x27b3   :  { %v2612_v5 = vpop.eup %2611 }
0x27b4   :  { %1922 = vrot.lane.b32.xlu0 %v2612_v5, %s2674_s30 }
0x27b5   :  { %v2614_v54 = vpop.eup %2613 }
0x27b6   :  { %v1913_v12 = vadd.f32 1.0, %v2614_v54 }
0x27b8   :  { %2615 = vrcp.f32 %v1913_v12 }
0x27c2   :  { %v2616_v55 = vpop.eup %2615 }
0x27c3   :  { %v1920_v60 = vmul.f32 %v2616_v55, %v1918_v59 }
0x2826   :  { %v1923_v57 = vpop.permute.xlu0 %1922 }
0x2827   :  { %v1925_v58 = vmul.f32 %v2616_v55, %v1923_v57 }
0x2829   :  { %1927 = vrot.lane.b32.xlu1 %v1925_v58, %s2675_s3 }
0x289b   :  { %v1928_v61 = vpop.permute.xlu1 %1927 }
0x289c   :  { %v1930_v62 = vadd.f32 %v1928_v61, %v1920_v60 }
0x289e   :  { %2617 = vtanh.f32 %v1930_v62 }
0x28a8   :  { %v2618_v56 = vpop.eup %2617 }
0x28a9   :  { %1933 = vrot.lane.b32.xlu0 %v2618_v56, %s2674_s30 }
0x291b   :  { %v1934_v17 = vpop.permute.xlu0 %1933 }
0x291c   :  { %v1936_v63 = vmul.f32 %v2616_v55, %v1934_v17 }
0x291e   :  { %v1943_v15 = vsel %vm1004_vm8, %v1942_v47, %v1936_v63 }
0x291f   :  { %1945 = vrot.lane.b32.xlu1 %v1943_v15, %s2675_s3 }
0x2991   :  { %v1946_v2 = vpop.permute.xlu1 %1945 }
0x2992   :  { %2366 = vmatmul.mubr.msk.f32.vlgmr.msra.gmra.mrb[18].mxu0 %vm72_vm1, %v1946_v2 }
0x2a65   :  { %v2015_v3 = vpop.f32.mrb[18].mxu0 }
0x2a66   :  { %v2016_v4 = vadd.f32 %v2949_v37, %v2015_v3  ;;  %v2367_v19 = vpop.f32.mrb[19].mxu0 }
0x2a68   :  { %2063 = vst.msk [vmem:[%s3045_s6 + $0x8] sm:$0xff] %vm1087_vm9, %v2016_v4 }
0x2a69   :  { %2025 = vsyncpa [#allocation3], 1 }
0x2a6a   :  { %2026 = vsyncpa [#allocation5], 1 }

</bundles_post_ra>
